<compile_context>
chip_gen: v7x
topology: tpu7x:2x2x1
jax: 0.10.0
libtpu: 0.0.40
codegen_flags: <defaults>
</compile_context>

<pallas_src>
import jax
import jax.numpy as jnp
from jax.experimental import pallas as pl
from jax.experimental.pallas import tpu as pltpu


TILE_E = 256   # edge tile = contraction depth of the scatter matmul
               # (256 fills v6e/v7x MXU; 128 is enough on v5e)


def _round_up(x, m):
    return ((x + m - 1) // m) * m


def _make_kernel(n_nodes, n_pad, tile_e):
    """Builds the fused 2-layer SAGE kernel with static sizes baked in."""

    def kernel(h0_hbm, src_ref, dst_ref, wedge_ref,
               wself_ref, wneigh_ref, bias_ref, gamma_ref, beta_ref,
               o_ref, acc_ref, cur_ref, selfp_ref, dma_sem):
        l = pl.program_id(0)           # layer (sequential dependence)
        t = pl.program_id(1)           # edge tile (reduction axis, last)
        n_l = pl.num_programs(0)
        n_t = pl.num_programs(1)

        # One-time DMA of the bf16 layer-1 features straight into the resident
        # feature scratch (no double-buffered auto-pipelined HBM resident).
        @pl.when((l == 0) & (t == 0))
        def _():
            cp = pltpu.make_async_copy(h0_hbm, cur_ref, dma_sem)
            cp.start()
            cp.wait()

        # Per-layer init: zero the neighbour accumulator and hoist the self
        # projection so it overlaps with the (DMA-bound) edge loop.
        @pl.when(t == 0)
        def _():
            acc_ref[...] = jnp.zeros_like(acc_ref)
            selfp_ref[...] = jnp.dot(cur_ref[...], wself_ref[0],
                                     preferred_element_type=jnp.float32)

        feats = cur_ref[...]                                   # (Np, Dp) bf16

        # Build gather / scatter one-hots in-kernel from int32 indices.
        # Padded edges carry index n_pad (never matches) and zero weights.
        src = src_ref[...]                                     # (tile_e, 1)
        dst = dst_ref[...]                                     # (1, tile_e)
        gmat = (jax.lax.broadcasted_iota(jnp.int32, (tile_e, n_pad), 1)
                == src).astype(jnp.bfloat16)                   # (tile_e, Np)
        smat = (jax.lax.broadcasted_iota(jnp.int32, (n_pad, tile_e), 0)
                == dst).astype(jnp.bfloat16)                   # (Np, tile_e)

        # msg = (h[src] * rel_w[etype]) / deg[dst]   (1/deg folded into wedge)
        msg = jnp.dot(gmat, feats, preferred_element_type=jnp.float32)
        msg = msg * wedge_ref[...].astype(jnp.float32)
        acc_ref[...] += jnp.dot(smat, msg.astype(jnp.bfloat16),
                                preferred_element_type=jnp.float32)

        # Layer finalize: neigh projection, BatchNorm (single-pass, masked
        # against padded node rows), ReLU.
        @pl.when(t == n_t - 1)
        def _():
            y = (selfp_ref[...]
                 + jnp.dot(acc_ref[...].astype(jnp.bfloat16), wneigh_ref[0],
                           preferred_element_type=jnp.float32)
                 + bias_ref[0])
            valid = (jax.lax.broadcasted_iota(jnp.int32, (n_pad, 1), 0)
                     < n_nodes).astype(jnp.float32)            # (Np, 1)
            ym = y * valid
            inv_n = 1.0 / n_nodes
            mean = jnp.sum(ym, axis=0, keepdims=True) * inv_n
            var = jnp.maximum(
                jnp.sum(ym * ym, axis=0, keepdims=True) * inv_n - mean * mean,
                0.0)
            y = (y - mean) * jax.lax.rsqrt(var + 1e-5) * gamma_ref[0] + beta_ref[0]
            h_new = jnp.maximum(y, 0.0) * valid    # zero padded node rows

            @pl.when(l + 1 < n_l)                  # feed layer 2 inside VMEM
            def _():
                cur_ref[...] = h_new.astype(jnp.bfloat16)

            @pl.when(l == n_l - 1)                 # final layer -> output
            def _():
                o_ref[...] = h_new

    return kernel


@jax.jit
def graphsage_forward(node_idx, src, dst, etype,
                      pre_embed, rel_weight, params1, params2):
    N = node_idx.shape[0]
    E = src.shape[0]
    D = pre_embed.shape[1]
    Dp = _round_up(D, 128)          # lane-dense feature dim
    Np = _round_up(N, 128)          # lane-dense node dim (gather-tile lanes)
    Ep = _round_up(E, TILE_E)
    n_t = Ep // TILE_E

    # ---- one-time glue outside the kernel hot path ----
    h0 = jnp.zeros((Np, Dp), jnp.bfloat16).at[:N, :D].set(
        pre_embed[node_idx].astype(jnp.bfloat16))

    # 'mean' aggregation: fold 1/in_degree into the per-edge vector weights.
    deg = jnp.zeros((N,), jnp.float32).at[dst].add(1.0)
    inv_deg = 1.0 / jnp.maximum(deg, 1.0)          # zero-in-degree -> neigh = 0
    wedge = jnp.zeros((Ep, Dp), jnp.bfloat16).at[:E, :D].set(
        (rel_weight[etype] * inv_deg[dst][:, None]).astype(jnp.bfloat16))

    # Edge index tiles; padded edges point at node Np (out of range) so the
    # in-kernel one-hot compares never match them.
    src_col = jnp.full((Ep, 1), Np, jnp.int32).at[:E, 0].set(src.astype(jnp.int32))
    dst_row = jnp.full((1, Ep), Np, jnp.int32).at[0, :E].set(dst.astype(jnp.int32))

    def pad_params(p):
        W_self, W_neigh, bias, gamma, beta = p
        wst = jnp.zeros((Dp, Dp), jnp.bfloat16).at[:D, :D].set(
            W_self.T.astype(jnp.bfloat16))
        wnt = jnp.zeros((Dp, Dp), jnp.bfloat16).at[:D, :D].set(
            W_neigh.T.astype(jnp.bfloat16))
        b = jnp.zeros((1, Dp), jnp.float32).at[0, :D].set(bias)
        g = jnp.ones((1, Dp), jnp.float32).at[0, :D].set(gamma)
        bt = jnp.zeros((1, Dp), jnp.float32).at[0, :D].set(beta)
        return wst, wnt, b, g, bt

    p1 = pad_params(params1)
    p2 = pad_params(params2)
    wself = jnp.stack([p1[0], p2[0]])        # (2, Dp, Dp) bf16
    wneigh = jnp.stack([p1[1], p2[1]])       # (2, Dp, Dp) bf16
    bias = jnp.stack([p1[2], p2[2]])         # (2, 1, Dp)  f32
    gamma = jnp.stack([p1[3], p2[3]])
    beta = jnp.stack([p1[4], p2[4]])

    kernel = _make_kernel(N, Np, TILE_E)
    per_layer3 = lambda l, t: (l, 0, 0)

    out = pl.pallas_call(
        kernel,
        out_shape=jax.ShapeDtypeStruct((Np, Dp), jnp.float32),
        grid_spec=pltpu.PrefetchScalarGridSpec(
            num_scalar_prefetch=0,
            grid=(2, n_t),                                     # (layer, edge-tile)
            in_specs=[
                pl.BlockSpec(memory_space=pl.ANY),             # h0 (HBM, DMA'd once)
                pl.BlockSpec((TILE_E, 1), lambda l, t: (t, 0)),   # src idx tile
                pl.BlockSpec((1, TILE_E), lambda l, t: (0, t)),   # dst idx tile
                pl.BlockSpec((TILE_E, Dp), lambda l, t: (t, 0)),  # rel_w/deg tile
                pl.BlockSpec((1, Dp, Dp), per_layer3),         # W_self^T  (stacked)
                pl.BlockSpec((1, Dp, Dp), per_layer3),         # W_neigh^T (stacked)
                pl.BlockSpec((1, 1, Dp), per_layer3),          # SAGE bias
                pl.BlockSpec((1, 1, Dp), per_layer3),          # BN gamma
                pl.BlockSpec((1, 1, Dp), per_layer3),          # BN beta
            ],
            out_specs=pl.BlockSpec((Np, Dp), lambda l, t: (0, 0)),
            scratch_shapes=[
                pltpu.VMEM((Np, Dp), jnp.float32),     # neighbour-mean accumulator
                pltpu.VMEM((Np, Dp), jnp.bfloat16),    # current layer input feats
                pltpu.VMEM((Np, Dp), jnp.float32),     # hoisted self projection
                pltpu.SemaphoreType.DMA(()),           # one-time h0 DMA semaphore
            ],
        ),
        compiler_params=pltpu.CompilerParams(
            dimension_semantics=("arbitrary", "arbitrary"),
            vmem_limit_bytes=48 * 1024 * 1024,         # < 64 MiB (v7x physical)
        ),
    )(h0, src_col, dst_row, wedge, wself, wneigh, bias, gamma, beta)

    return out[:N, :D]


if __name__ == "__main__":
    key = jax.random.PRNGKey(0)
    ks = jax.random.split(key, 10)

    # small synthetic config consistent with the module
    num_nodes = 16
    num_edges = 32
    emb_dim = 40
    subgraph_feature_num = 8
    D = emb_dim - subgraph_feature_num           # 32
    aug_num_rels = 4

    # synthetic graph
    node_idx = jnp.arange(num_nodes, dtype=jnp.int32)
    src = jax.random.randint(ks[0], (num_edges,), 0, num_nodes)
    dst = jax.random.randint(ks[1], (num_edges,), 0, num_nodes)
    etype = jax.random.randint(ks[2], (num_edges,), 0, aug_num_rels)

    # deterministic parameter init (kaiming-uniform-like scales)
    def ku(k, shape, fan_in):
        bound = jnp.sqrt(6.0 / fan_in)
        return jax.random.uniform(k, shape, jnp.float32, -bound, bound)

    pre_embed = ku(ks[3], (num_nodes, D), D)
    rel_weight = ku(ks[4], (aug_num_rels, D), D)

    def make_layer_params(k):
        k1, k2, k3 = jax.random.split(k, 3)
        W_self = ku(k1, (D, D), D)               # fc_self.weight (out, in)
        W_neigh = ku(k2, (D, D), D)              # fc_neigh.weight (out, in)
        bias = jnp.zeros((D,), jnp.float32)      # SAGEConv bias
        gamma = jnp.ones((D,), jnp.float32)      # BatchNorm1d weight
        beta = jnp.zeros((D,), jnp.float32)      # BatchNorm1d bias
        return (W_self, W_neigh, bias, gamma, beta)

    params1 = make_layer_params(ks[5])
    params2 = make_layer_params(ks[6])

    out = graphsage_forward(node_idx, src, dst, etype,
                            pre_embed, rel_weight, params1, params2)
    out = jax.block_until_ready(out)
    assert out.shape == (num_nodes, D)
    assert bool(jnp.all(jnp.isfinite(out)))
    print("KERNEL_OK")
</pallas_src>

<mosaic_0001>
module attributes {stable_mosaic.version = 11 : i64} {
  func.func private @main(%arg0: i32) attributes {dimension_semantics = [#tpu.dimension_semantics<core_parallel>], iteration_bounds = array<i64: 2>, tpu.core_type = #tpu.core_type<sc_scalar_subcore>, window_params = []} {
    return
  }
}

module attributes {stable_mosaic.version = 11 : i64} {
  func.func private @main(%arg0: i32) attributes {dimension_semantics = [#tpu.dimension_semantics<core_parallel>], iteration_bounds = array<i64: 2>, tpu.core_type = #tpu.core_type<sc_scalar_subcore>, window_params = []} {
    return
  }
}

module attributes {stable_mosaic.version = 11 : i64} {
  func.func @kernel(%arg0: i32, %arg1: i32, %arg2: memref<128x128xbf16, #tpu.memory_space<any>>, %arg3: memref<256x1xi32, #tpu.memory_space<vmem>>, %arg4: memref<1x256xi32, #tpu.memory_space<vmem>>, %arg5: memref<256x128xbf16, #tpu.memory_space<vmem>>, %arg6: memref<1x128x128xbf16, #tpu.memory_space<vmem>>, %arg7: memref<1x128x128xbf16, #tpu.memory_space<vmem>>, %arg8: memref<1x1x128xf32, #tpu.memory_space<vmem>>, %arg9: memref<1x1x128xf32, #tpu.memory_space<vmem>>, %arg10: memref<1x1x128xf32, #tpu.memory_space<vmem>>, %arg11: memref<128x128xf32, #tpu.memory_space<vmem>>, %arg12: memref<128x128xf32, #tpu.memory_space<vmem>>, %arg13: memref<128x128xbf16, #tpu.memory_space<vmem>>, %arg14: memref<128x128xf32, #tpu.memory_space<vmem>>, %arg15: memref<!tpu.dma_semaphore, #tpu.memory_space<semaphore_mem>>) attributes {dimension_semantics = [#tpu.dimension_semantics<arbitrary>, #tpu.dimension_semantics<arbitrary>], iteration_bounds = array<i64: 2, 1>, scalar_prefetch = 0 : i64, scratch_operands = 4 : i64, tpu.core_type = #tpu.core_type<tc>, window_params = [{}, {transform_indices = @transform_1, window_bounds = array<i64: 256, 1>}, {transform_indices = @transform_2, window_bounds = array<i64: 1, 256>}, {transform_indices = @transform_3, window_bounds = array<i64: 256, 128>}, {transform_indices = @transform_4, window_bounds = array<i64: 1, 128, 128>}, {transform_indices = @transform_5, window_bounds = array<i64: 1, 128, 128>}, {transform_indices = @transform_6, window_bounds = array<i64: 1, 1, 128>}, {transform_indices = @transform_7, window_bounds = array<i64: 1, 1, 128>}, {transform_indices = @transform_8, window_bounds = array<i64: 1, 1, 128>}, {pipeline_mode = #tpu.pipeline_mode<synchronous>, transform_indices = @transform_9, window_bounds = array<i64: 128, 128>}]} {
    %c0_i32 = arith.constant 0 : i32
    %0 = arith.cmpi eq, %arg0, %c0_i32 : i32
    %c0_i32_0 = arith.constant 0 : i32
    %1 = arith.cmpi eq, %arg1, %c0_i32_0 : i32
    %2 = arith.andi %0, %1 : i1
    %3 = arith.extui %2 : i1 to i32
    %c0_i32_1 = arith.constant 0 : i32
    %4 = arith.cmpi ne, %3, %c0_i32_1 : i32
    scf.if %4 {
      tpu.enqueue_dma source(%arg2 : memref<128x128xbf16, #tpu.memory_space<any>>) target(%arg13 : memref<128x128xbf16, #tpu.memory_space<vmem>>) target_semaphore(%arg15 : memref<!tpu.dma_semaphore, #tpu.memory_space<semaphore_mem>>)
      tpu.wait_dma2 semaphore(%arg15 : memref<!tpu.dma_semaphore, #tpu.memory_space<semaphore_mem>>) src(%arg2 : memref<128x128xbf16, #tpu.memory_space<any>>) dst(%arg13 : memref<128x128xbf16, #tpu.memory_space<vmem>>)
    } else {
    }
    %c0_i32_2 = arith.constant 0 : i32
    %5 = arith.cmpi eq, %arg1, %c0_i32_2 : i32
    %6 = arith.extui %5 : i1 to i32
    %c0_i32_3 = arith.constant 0 : i32
    %7 = arith.cmpi ne, %6, %c0_i32_3 : i32
    scf.if %7 {
      %cst_18 = arith.constant 0.000000e+00 : f32
      %35 = vector.broadcast %cst_18 : f32 to vector<128x128xf32>
      %c0_19 = arith.constant 0 : index
      %c0_20 = arith.constant 0 : index
      %36 = vector.load %arg12[%c0_19, %c0_20] : memref<128x128xf32, #tpu.memory_space<vmem>>, vector<128x128xf32>
      tpu.vector_store %arg12[%c0_19, %c0_20], %35 {strides = array<i32>} : memref<128x128xf32, #tpu.memory_space<vmem>>, vector<128x128xf32>,
      %c0_21 = arith.constant 0 : index
      %c0_22 = arith.constant 0 : index
      %37 = vector.load %arg13[%c0_21, %c0_22] : memref<128x128xbf16, #tpu.memory_space<vmem>>, vector<128x128xbf16>
      %c0_23 = arith.constant 0 : index
      %c0_24 = arith.constant 0 : index
      %c0_25 = arith.constant 0 : index
      %38 = vector.load %arg6[%c0_23, %c0_24, %c0_25] : memref<1x128x128xbf16, #tpu.memory_space<vmem>>, vector<1x128x128xbf16>
      %39 = vector.shape_cast %38 : vector<1x128x128xbf16> to vector<128x128xbf16>
      %cst_26 = arith.constant dense<0.000000e+00> : vector<128x128xf32>
      %40 = tpu.matmul %37, %39, %cst_26 {dimension_numbers = #tpu.dot_dimension_numbers<[1], [0], [0], [1], [0, 0, 1, 1], [], []>} : vector<128x128xbf16>, vector<128x128xbf16>, vector<128x128xf32> -> vector<128x128xf32>
      %c0_27 = arith.constant 0 : index
      %c0_28 = arith.constant 0 : index
      %41 = vector.load %arg14[%c0_27, %c0_28] : memref<128x128xf32, #tpu.memory_space<vmem>>, vector<128x128xf32>
      tpu.vector_store %arg14[%c0_27, %c0_28], %40 {strides = array<i32>} : memref<128x128xf32, #tpu.memory_space<vmem>>, vector<128x128xf32>,
    } else {
    }
    %c0 = arith.constant 0 : index
    %c0_4 = arith.constant 0 : index
    %8 = vector.load %arg13[%c0, %c0_4] : memref<128x128xbf16, #tpu.memory_space<vmem>>, vector<128x128xbf16>
    %c0_5 = arith.constant 0 : index
    %c0_6 = arith.constant 0 : index
    %9 = vector.load %arg3[%c0_5, %c0_6] : memref<256x1xi32, #tpu.memory_space<vmem>>, vector<256x1xi32>
    %c0_7 = arith.constant 0 : index
    %c0_8 = arith.constant 0 : index
    %10 = vector.load %arg4[%c0_7, %c0_8] : memref<1x256xi32, #tpu.memory_space<vmem>>, vector<1x256xi32>
    %11 = tpu.iota {dimensions = array<i32: 1>} : vector<256x128xi32>
    %12 = vector.broadcast %9 : vector<256x1xi32> to vector<256x128xi32>
    %13 = arith.cmpi eq, %11, %12 : vector<256x128xi32>
    %14 = arith.extui %13 : vector<256x128xi1> to vector<256x128xi32>
    %15 = arith.sitofp %14 : vector<256x128xi32> to vector<256x128xf32>
    %16 = arith.truncf %15 : vector<256x128xf32> to vector<256x128xbf16>
    %17 = tpu.iota {dimensions = array<i32: 0>} : vector<128x256xi32>
    %18 = vector.broadcast %10 : vector<1x256xi32> to vector<128x256xi32>
    %19 = arith.cmpi eq, %17, %18 : vector<128x256xi32>
    %20 = arith.extui %19 : vector<128x256xi1> to vector<128x256xi32>
    %21 = arith.sitofp %20 : vector<128x256xi32> to vector<128x256xf32>
    %22 = arith.truncf %21 : vector<128x256xf32> to vector<128x256xbf16>
    %cst = arith.constant dense<0.000000e+00> : vector<256x128xf32>
    %23 = tpu.matmul %16, %8, %cst {dimension_numbers = #tpu.dot_dimension_numbers<[1], [0], [0], [1], [0, 0, 1, 1], [], []>} : vector<256x128xbf16>, vector<128x128xbf16>, vector<256x128xf32> -> vector<256x128xf32>
    %c0_9 = arith.constant 0 : index
    %c0_10 = arith.constant 0 : index
    %24 = vector.load %arg5[%c0_9, %c0_10] : memref<256x128xbf16, #tpu.memory_space<vmem>>, vector<256x128xbf16>
    %25 = arith.extf %24 : vector<256x128xbf16> to vector<256x128xf32>
    %26 = arith.mulf %23, %25 : vector<256x128xf32>
    %c0_11 = arith.constant 0 : index
    %c0_12 = arith.constant 0 : index
    %27 = vector.load %arg12[%c0_11, %c0_12] : memref<128x128xf32, #tpu.memory_space<vmem>>, vector<128x128xf32>
    %28 = arith.truncf %26 : vector<256x128xf32> to vector<256x128xbf16>
    %cst_13 = arith.constant dense<0.000000e+00> : vector<128x128xf32>
    %29 = tpu.matmul %22, %28, %cst_13 {dimension_numbers = #tpu.dot_dimension_numbers<[1], [0], [0], [1], [0, 0, 1, 1], [], []>} : vector<128x256xbf16>, vector<256x128xbf16>, vector<128x128xf32> -> vector<128x128xf32>
    %30 = arith.addf %27, %29 : vector<128x128xf32>
    %c0_14 = arith.constant 0 : index
    %c0_15 = arith.constant 0 : index
    %31 = vector.load %arg12[%c0_14, %c0_15] : memref<128x128xf32, #tpu.memory_space<vmem>>, vector<128x128xf32>
    tpu.vector_store %arg12[%c0_14, %c0_15], %30 {strides = array<i32>} : memref<128x128xf32, #tpu.memory_space<vmem>>, vector<128x128xf32>,
    %c0_i32_16 = arith.constant 0 : i32
    %32 = arith.cmpi eq, %arg1, %c0_i32_16 : i32
    %33 = arith.extui %32 : i1 to i32
    %c0_i32_17 = arith.constant 0 : i32
    %34 = arith.cmpi ne, %33, %c0_i32_17 : i32
    scf.if %34 {
      %c0_18 = arith.constant 0 : index
      %c0_19 = arith.constant 0 : index
      %35 = vector.load %arg14[%c0_18, %c0_19] : memref<128x128xf32, #tpu.memory_space<vmem>>, vector<128x128xf32>
      %c0_20 = arith.constant 0 : index
      %c0_21 = arith.constant 0 : index
      %36 = vector.load %arg12[%c0_20, %c0_21] : memref<128x128xf32, #tpu.memory_space<vmem>>, vector<128x128xf32>
      %37 = arith.truncf %36 : vector<128x128xf32> to vector<128x128xbf16>
      %c0_22 = arith.constant 0 : index
      %c0_23 = arith.constant 0 : index
      %c0_24 = arith.constant 0 : index
      %38 = vector.load %arg7[%c0_22, %c0_23, %c0_24] : memref<1x128x128xbf16, #tpu.memory_space<vmem>>, vector<1x128x128xbf16>
      %39 = vector.shape_cast %38 : vector<1x128x128xbf16> to vector<128x128xbf16>
      %cst_25 = arith.constant dense<0.000000e+00> : vector<128x128xf32>
      %40 = tpu.matmul %37, %39, %cst_25 {dimension_numbers = #tpu.dot_dimension_numbers<[1], [0], [0], [1], [0, 0, 1, 1], [], []>} : vector<128x128xbf16>, vector<128x128xbf16>, vector<128x128xf32> -> vector<128x128xf32>
      %41 = arith.addf %35, %40 : vector<128x128xf32>
      %c0_26 = arith.constant 0 : index
      %c0_27 = arith.constant 0 : index
      %c0_28 = arith.constant 0 : index
      %42 = vector.load %arg8[%c0_26, %c0_27, %c0_28] : memref<1x1x128xf32, #tpu.memory_space<vmem>>, vector<1x1x128xf32>
      %43 = vector.shape_cast %42 : vector<1x1x128xf32> to vector<1x128xf32>
      %44 = vector.broadcast %43 : vector<1x128xf32> to vector<128x128xf32>
      %45 = arith.addf %41, %44 : vector<128x128xf32>
      %46 = tpu.iota {dimensions = array<i32: 0>} : vector<128x1xi32>
      %c16_i32 = arith.constant 16 : i32
      %47 = vector.broadcast %c16_i32 : i32 to vector<128x1xi32>
      %48 = arith.cmpi slt, %46, %47 : vector<128x1xi32>
      %49 = arith.extui %48 : vector<128x1xi1> to vector<128x1xi32>
      %50 = arith.sitofp %49 : vector<128x1xi32> to vector<128x1xf32>
      %51 = vector.broadcast %50 : vector<128x1xf32> to vector<128x128xf32>
      %52 = arith.mulf %45, %51 : vector<128x128xf32>
      %cst_29 = arith.constant dense<0.000000e+00> : vector<128xf32>
      %53 = vector.multi_reduction <add>, %52, %cst_29 [0] : vector<128x128xf32> to vector<128xf32>
      %54 = vector.shape_cast %53 : vector<128xf32> to vector<1x128xf32>
      %cst_30 = arith.constant 6.250000e-02 : f32
      %55 = vector.broadcast %cst_30 : f32 to vector<1x128xf32>
      %56 = arith.mulf %54, %55 : vector<1x128xf32>
      %57 = arith.mulf %52, %52 : vector<128x128xf32>
      %cst_31 = arith.constant dense<0.000000e+00> : vector<128xf32>
      %58 = vector.multi_reduction <add>, %57, %cst_31 [0] : vector<128x128xf32> to vector<128xf32>
      %59 = vector.shape_cast %58 : vector<128xf32> to vector<1x128xf32>
      %cst_32 = arith.constant 6.250000e-02 : f32
      %60 = vector.broadcast %cst_32 : f32 to vector<1x128xf32>
      %61 = arith.mulf %59, %60 : vector<1x128xf32>
      %62 = arith.mulf %56, %56 : vector<1x128xf32>
      %63 = arith.subf %61, %62 : vector<1x128xf32>
      %cst_33 = arith.constant 0.000000e+00 : f32
      %64 = vector.broadcast %cst_33 : f32 to vector<1x128xf32>
      %65 = arith.maximumf %63, %64 : vector<1x128xf32>
      %66 = vector.broadcast %56 : vector<1x128xf32> to vector<128x128xf32>
      %67 = arith.subf %45, %66 : vector<128x128xf32>
      %cst_34 = arith.constant 9.99999974E-6 : f32
      %68 = vector.broadcast %cst_34 : f32 to vector<1x128xf32>
      %69 = arith.addf %65, %68 : vector<1x128xf32>
      %70 = math.rsqrt %69 : vector<1x128xf32>
      %71 = vector.broadcast %70 : vector<1x128xf32> to vector<128x128xf32>
      %72 = arith.mulf %67, %71 : vector<128x128xf32>
      %c0_35 = arith.constant 0 : index
      %c0_36 = arith.constant 0 : index
      %c0_37 = arith.constant 0 : index
      %73 = vector.load %arg9[%c0_35, %c0_36, %c0_37] : memref<1x1x128xf32, #tpu.memory_space<vmem>>, vector<1x1x128xf32>
      %74 = vector.shape_cast %73 : vector<1x1x128xf32> to vector<1x128xf32>
      %75 = vector.broadcast %74 : vector<1x128xf32> to vector<128x128xf32>
      %76 = arith.mulf %72, %75 : vector<128x128xf32>
      %c0_38 = arith.constant 0 : index
      %c0_39 = arith.constant 0 : index
      %c0_40 = arith.constant 0 : index
      %77 = vector.load %arg10[%c0_38, %c0_39, %c0_40] : memref<1x1x128xf32, #tpu.memory_space<vmem>>, vector<1x1x128xf32>
      %78 = vector.shape_cast %77 : vector<1x1x128xf32> to vector<1x128xf32>
      %79 = vector.broadcast %78 : vector<1x128xf32> to vector<128x128xf32>
      %80 = arith.addf %76, %79 : vector<128x128xf32>
      %cst_41 = arith.constant 0.000000e+00 : f32
      %81 = vector.broadcast %cst_41 : f32 to vector<128x128xf32>
      %82 = arith.maximumf %80, %81 : vector<128x128xf32>
      %83 = vector.broadcast %50 : vector<128x1xf32> to vector<128x128xf32>
      %84 = arith.mulf %82, %83 : vector<128x128xf32>
      %c1_i32 = arith.constant 1 : i32
      %85 = arith.addi %arg0, %c1_i32 : i32
      %c2_i32 = arith.constant 2 : i32
      %86 = arith.cmpi slt, %85, %c2_i32 : i32
      %87 = arith.extui %86 : i1 to i32
      %c0_i32_42 = arith.constant 0 : i32
      %88 = arith.cmpi ne, %87, %c0_i32_42 : i32
      scf.if %88 {
        %92 = arith.truncf %84 : vector<128x128xf32> to vector<128x128xbf16>
        %c0_45 = arith.constant 0 : index
        %c0_46 = arith.constant 0 : index
        %93 = vector.load %arg13[%c0_45, %c0_46] : memref<128x128xbf16, #tpu.memory_space<vmem>>, vector<128x128xbf16>
        tpu.vector_store %arg13[%c0_45, %c0_46], %92 {strides = array<i32>} : memref<128x128xbf16, #tpu.memory_space<vmem>>, vector<128x128xbf16>,
      } else {
      }
      %c1_i32_43 = arith.constant 1 : i32
      %89 = arith.cmpi eq, %arg0, %c1_i32_43 : i32
      %90 = arith.extui %89 : i1 to i32
      %c0_i32_44 = arith.constant 0 : i32
      %91 = arith.cmpi ne, %90, %c0_i32_44 : i32
      scf.if %91 {
        %c0_45 = arith.constant 0 : index
        %c0_46 = arith.constant 0 : index
        %92 = vector.load %arg11[%c0_45, %c0_46] : memref<128x128xf32, #tpu.memory_space<vmem>>, vector<128x128xf32>
        tpu.vector_store %arg11[%c0_45, %c0_46], %84 {strides = array<i32>} : memref<128x128xf32, #tpu.memory_space<vmem>>, vector<128x128xf32>,
      } else {
      }
    } else {
    }
    return
  }
  func.func @transform_1(%arg0: i32, %arg1: i32) -> (i32, i32) {
    %c0_i32 = arith.constant 0 : i32
    %c0_i32_0 = arith.constant 0 : i32
    return %arg1, %c0_i32 : i32, i32
  }
  func.func @transform_2(%arg0: i32, %arg1: i32) -> (i32, i32) {
    %c0_i32 = arith.constant 0 : i32
    %c0_i32_0 = arith.constant 0 : i32
    return %c0_i32, %arg1 : i32, i32
  }
  func.func @transform_3(%arg0: i32, %arg1: i32) -> (i32, i32) {
    %c0_i32 = arith.constant 0 : i32
    %c0_i32_0 = arith.constant 0 : i32
    return %arg1, %c0_i32 : i32, i32
  }
  func.func @transform_4(%arg0: i32, %arg1: i32) -> (i32, i32, i32) {
    %c0_i32 = arith.constant 0 : i32
    %c0_i32_0 = arith.constant 0 : i32
    %c0_i32_1 = arith.constant 0 : i32
    return %arg0, %c0_i32, %c0_i32_0 : i32, i32, i32
  }
  func.func @transform_5(%arg0: i32, %arg1: i32) -> (i32, i32, i32) {
    %c0_i32 = arith.constant 0 : i32
    %c0_i32_0 = arith.constant 0 : i32
    %c0_i32_1 = arith.constant 0 : i32
    return %arg0, %c0_i32, %c0_i32_0 : i32, i32, i32
  }
  func.func @transform_6(%arg0: i32, %arg1: i32) -> (i32, i32, i32) {
    %c0_i32 = arith.constant 0 : i32
    %c0_i32_0 = arith.constant 0 : i32
    %c0_i32_1 = arith.constant 0 : i32
    return %arg0, %c0_i32, %c0_i32_0 : i32, i32, i32
  }
  func.func @transform_7(%arg0: i32, %arg1: i32) -> (i32, i32, i32) {
    %c0_i32 = arith.constant 0 : i32
    %c0_i32_0 = arith.constant 0 : i32
    %c0_i32_1 = arith.constant 0 : i32
    return %arg0, %c0_i32, %c0_i32_0 : i32, i32, i32
  }
  func.func @transform_8(%arg0: i32, %arg1: i32) -> (i32, i32, i32) {
    %c0_i32 = arith.constant 0 : i32
    %c0_i32_0 = arith.constant 0 : i32
    %c0_i32_1 = arith.constant 0 : i32
    return %arg0, %c0_i32, %c0_i32_0 : i32, i32, i32
  }
  func.func @transform_9(%arg0: i32, %arg1: i32) -> (i32, i32) {
    %c0_i32 = arith.constant 0 : i32
    %c0_i32_0 = arith.constant 0 : i32
    %c0_i32_1 = arith.constant 0 : i32
    return %c0_i32, %c0_i32_0 : i32, i32
  }
}

</mosaic_0001>

<bundles_post_ra>
// kernel: graphsage_forward.1
= control target key start
LH: loop header
LB: loop body
LE: loop exit
PB: predicated region body
PF: predicated region fallthrough
CT: control target
= control target key end

     0   :  { %s2779_s30 = smov 0   ;;  %s2781_s10 = smov 0   ;;  %s3517_s0 = inlined_call_operand.vmem [shape: bf16[128,128], index: 0, kind: input, shape index: {}]   ;;  %s3518_s1 = inlined_call_operand.vmem [shape: s32[256,1], index: 1, kind: input, shape index: {}]   ;;  %s3519_s2 = inlined_call_operand.vmem [shape: s32[1,256], index: 2, kind: input, shape index: {}]   ;;  %s3520_s3 = inlined_call_operand.vmem [shape: bf16[256,128], index: 3, kind: input, shape index: {}]   ;;  %s3521_s4 = inlined_call_operand.vmem [shape: bf16[2,128,128], index: 4, kind: input, shape index: {}]   ;;  %s3522_s5 = inlined_call_operand.vmem [shape: bf16[2,128,128], index: 5, kind: input, shape index: {}]   ;;  %s3523_s6 = inlined_call_operand.vmem [shape: f32[2,1,128], index: 6, kind: input, shape index: {}]   ;;  %s3524_s7 = inlined_call_operand.vmem [shape: f32[2,1,128], index: 7, kind: input, shape index: {}]   ;;  %s3525_s8 = inlined_call_operand.vmem [shape: f32[2,1,128], index: 8, kind: input, shape index: {}]   ;;  %s3526_s9 = inlined_call_operand.vmem [shape: f32[128,128], index: 9, kind: output, shape index: {}]  }
   0x1   :  { %s2783_s11 = smov 0  }
   0x2 LB: > { %s31_s12 = sadd.s32 1, %s2721_s10  ;;  %p2167_p0 = scmp.ge.s32.totalorder %s2725_s11, 1  ;;  %s2725_s11 = sphi %s2783_s11, %s19_s11   ;;  %s2721_s10 = sphi %s2781_s10, %s3580_s10   ;;  %s2717_s30 = sphi %s2779_s30, %s3579_s30  }
   0x3   : > { %p33_p1 = scmp.ge.s32.totalorder %s31_s12, 2  ;;  %p336_p2 = scmp.lt.s32.totalorder %s2725_s11, 3 }
   0x5   : > { %s3582_s12 = smov (%p33_p1, %s31_s12), 0  ;;  %p337_p3 = pnand %p2167_p0, %p336_p2 }
   0x7   : > { %340 = sbr.rel (%p337_p3) target bundleno = 1017 (0x3f9), region = 52 }
   0xe   : > { %p410_p4 = scmp.lt.s32.totalorder %s2717_s30, 1  ;;  %p430_p5 = scmp.eq.s32.totalorder %s2717_s30, 0 }
   0xf   : > { %v468_v0 = vld [vmem:[%s3517_s0] sm:$0xff] (%p430_p5)  ;;  %v470_v1 = vld [vmem:[%s3517_s0 + $0x8] sm:$0xff] (%p430_p5)  ;;  %v472_v2 = vld [vmem:[%s3517_s0 + $0x10] sm:$0xff] (%p430_p5) }
  0x10   : > { %s2802_s13 = scalar_select %p410_p4, %s2717_s30, 1 }
  0x11   : > { %435 = sbr.rel (!%p430_p5) target bundleno = 27 (0x1b), region = 56  ;;  %469 = vst [vmem:[#allocation3] sm:$0xff] (%p430_p5), %v468_v0  ;;  %471 = vst [vmem:[#allocation3 + $0x8] sm:$0xff] (%p430_p5), %v470_v1  ;;  %v474_v3 = vld [vmem:[%s3517_s0 + $0x18] sm:$0xff] (%p430_p5)  ;;  %v476_v4 = vld [vmem:[%s3517_s0 + $0x20] sm:$0xff] (%p430_p5) }
  0x12   : > { %s2325_s14 = sshll.u32 %s2802_s13, 6  ;;  %s422_s17 = scalar_lea.vmem %s3523_s6, %s2802_s13  ;;  %473 = vst [vmem:[#allocation3 + $0x10] sm:$0xff] (%p430_p5), %v472_v2  ;;  %v478_v5 = vld [vmem:[%s3517_s0 + $0x28] sm:$0xff] (%p430_p5)  ;;  %475 = vst [vmem:[#allocation3 + $0x18] sm:$0xff] (%p430_p5), %v474_v3  ;;  %v480_v6 = vld [vmem:[%s3517_s0 + $0x30] sm:$0xff] (%p430_p5) }
  0x13   : > { %s2812_s20 = scalar_lea.vmem %s3521_s4, %s2325_s14  ;;  %s2817_s23 = scalar_lea.vmem %s3522_s5, %s2325_s14  ;;  %477 = vst [vmem:[#allocation3 + $0x20] sm:$0xff] (%p430_p5), %v476_v4  ;;  %479 = vst [vmem:[#allocation3 + $0x28] sm:$0xff] (%p430_p5), %v478_v5  ;;  %v482_v7 = vld [vmem:[%s3517_s0 + $0x38] sm:$0xff] (%p430_p5) }
  0x14   : > { %s425_s26 = scalar_lea.vmem %s3524_s7, %s2802_s13  ;;  %s428_s29 = scalar_lea.vmem %s3525_s8, %s2802_s13  ;;  %481 = vst [vmem:[#allocation3 + $0x30] sm:$0xff] (%p430_p5), %v480_v6  ;;  %483 = vst [vmem:[#allocation3 + $0x38] sm:$0xff] (%p430_p5), %v482_v7 }
  0x18   : > { %491 = vsyncadd [#allocation5], 1024 }
  0x19   : > { %2713 = dma.done.wait [#allocation5], 1024 }
  0x1a   : > { %2714 = vsyncadd [#allocation5], 4294966272 }
  0x1b PF: > { %v710_v8 = vld [vmem:[%s3518_s1 + $0x10] sm:$0xff]  ;;  %v708_v9 = vld [vmem:[%s3518_s1] sm:$0xff]  ;;  %v2727_v10 = vmov 0   ;;  %v711_v11 = vld [vmem:[%s3518_s1 + $0x18] sm:$0xff]  ;;  %v741_v57 = vlaneseq  ;;  %v3527_v63 = vmov 1.0|1.0  }
  0x1c   : > { %2682 = vset.pattern.permute.xlu1 %v2727_v10  ;;  %2681 = vset.pattern.permute.xlu0 %v2727_v10  ;;  %v709_v12 = vld [vmem:[%s3518_s1 + $0x8] sm:$0xff]  ;;  %v712_v14 = vld [vmem:[%s3518_s1 + $0x20] sm:$0xff]  ;;  %v715_v15 = vld [vmem:[%s3518_s1 + $0x38] sm:$0xff] }
  0x1d   : > { %750 = vperm.xlu1 %2682, %v710_v8   ;;  %744 = vperm.xlu0 %2681, %v708_v9   ;;  %v713_v13 = vld [vmem:[%s3518_s1 + $0x28] sm:$0xff]  ;;  %v714_v16 = vld [vmem:[%s3518_s1 + $0x30] sm:$0xff]  ;;  %v2683_v17 = vld [vmem:[%s2812_s20] sm:$0xff]   ;;  %v2956_v60 = vand.u32 127, %v741_v57 }
  0x1e   : > { %v2684_v18 = vld [vmem:[%s2812_s20 + $0x8] sm:$0xff]   ;;  %2527 = vmatprep.subr.bf16.mxu1 %v2683_v17  ;;  %v716_v20 = vld [vmem:[%s3518_s1 + $0x40] sm:$0xff]  ;;  %v2685_v21 = vld [vmem:[%s2812_s20 + $0x10] sm:$0xff]  }
  0x1f   : > { %v717_v19 = vld [vmem:[%s3518_s1 + $0x48] sm:$0xff]  ;;  %2528 = vmatpush3.bf16.msra.mxu1 %v2683_v17  ;;  %v515_v22 = vld [vmem:[#allocation3] sm:$0xff]  ;;  %v719_v23 = vld [vmem:[%s3518_s1 + $0x58] sm:$0xff] }
  0x20   : > { %2529 = vmatprep.subr.bf16.mxu1 %v2684_v18  ;;  %v718_v24 = vld [vmem:[%s3518_s1 + $0x50] sm:$0xff]  ;;  %2543 = vmatprep.mubr.bf16.mxu1 %v515_v22  ;;  %v2686_v25 = vld [vmem:[%s2812_s20 + $0x18] sm:$0xff]   ;;  %v721_v26 = vld [vmem:[%s3518_s1 + $0x68] sm:$0xff] }
  0x21   : > { %753 = vperm.xlu1 %2682, %v711_v11   ;;  %747 = vperm.xlu0 %2681, %v709_v12   ;;  %v720_v27 = vld [vmem:[%s3518_s1 + $0x60] sm:$0xff]  ;;  %v723_v29 = vld [vmem:[%s3518_s1 + $0x78] sm:$0xff]  ;;  %v722_v30 = vld [vmem:[%s3518_s1 + $0x70] sm:$0xff] }
  0x22   : > { %v2687_v28 = vld [vmem:[%s2812_s20 + $0x20] sm:$0xff]   ;;  %v2688_v31 = vld [vmem:[%s2812_s20 + $0x28] sm:$0xff]   ;;  %v2689_v34 = vld [vmem:[%s2812_s20 + $0x30] sm:$0xff]  }
  0x23   : > { %2530 = vmatpush3.bf16.msra.mxu1 %v2684_v18  ;;  %v725_v32 = vld [vmem:[%s3518_s1 + $0x88] sm:$0xff]  ;;  %v724_v33 = vld [vmem:[%s3518_s1 + $0x80] sm:$0xff]  ;;  %v727_v35 = vld [vmem:[%s3518_s1 + $0x98] sm:$0xff] }
  0x24   : > { %2531 = vmatprep.subr.bf16.mxu1 %v2685_v21  ;;  %v726_v36 = vld [vmem:[%s3518_s1 + $0x90] sm:$0xff]  ;;  %v2690_v37 = vld [vmem:[%s2812_s20 + $0x38] sm:$0xff]   ;;  %v729_v38 = vld [vmem:[%s3518_s1 + $0xa8] sm:$0xff] }
  0x25   : > { %759 = vperm.xlu1 %2682, %v713_v13   ;;  %756 = vperm.xlu0 %2681, %v712_v14   ;;  %v728_v39 = vld [vmem:[%s3518_s1 + $0xa0] sm:$0xff]  ;;  %v731_v40 = vld [vmem:[%s3518_s1 + $0xb8] sm:$0xff]  ;;  %v730_v41 = vld [vmem:[%s3518_s1 + $0xb0] sm:$0xff] }
  0x26   : > { %v516_v42 = vld [vmem:[#allocation3 + $0x8] sm:$0xff]  ;;  %v517_v43 = vld [vmem:[#allocation3 + $0x10] sm:$0xff]  ;;  %v733_v44 = vld [vmem:[%s3518_s1 + $0xc8] sm:$0xff] }
  0x27   : > { %2532 = vmatpush3.bf16.msra.mxu1 %v2685_v21  ;;  %v732_v45 = vld [vmem:[%s3518_s1 + $0xc0] sm:$0xff]  ;;  %v735_v46 = vld [vmem:[%s3518_s1 + $0xd8] sm:$0xff]  ;;  %v734_v47 = vld [vmem:[%s3518_s1 + $0xd0] sm:$0xff] }
  0x28   : > { %2533 = vmatprep.subr.bf16.mxu1 %v2686_v25  ;;  %v518_v48 = vld [vmem:[#allocation3 + $0x18] sm:$0xff]  ;;  %v519_v49 = vld [vmem:[#allocation3 + $0x20] sm:$0xff]  ;;  %v736_v51 = vld [vmem:[%s3518_s1 + $0xe0] sm:$0xff] }
  0x29   : > { %765 = vperm.xlu1 %2682, %v715_v15   ;;  %762 = vperm.xlu0 %2681, %v714_v16   ;;  %v737_v50 = vld [vmem:[%s3518_s1 + $0xe8] sm:$0xff]  ;;  %v739_v52 = vld [vmem:[%s3518_s1 + $0xf8] sm:$0xff]  ;;  %v738_v53 = vld [vmem:[%s3518_s1 + $0xf0] sm:$0xff] }
  0x2a   : > { %v520_v54 = vld [vmem:[#allocation3 + $0x28] sm:$0xff]  ;;  %v521_v55 = vld [vmem:[#allocation3 + $0x30] sm:$0xff]  ;;  %v522_v56 = vld [vmem:[#allocation3 + $0x38] sm:$0xff] }
  0x2b   : > { %2534 = vmatpush3.bf16.msra.mxu1 %v2686_v25 }
  0x2c   : > { %2535 = vmatprep.subr.bf16.mxu1 %v2687_v28 }
  0x2d   : > { %771 = vperm.xlu1 %2682, %v717_v19   ;;  %768 = vperm.xlu0 %2681, %v716_v20  }
  0x2f   : > { %2536 = vmatpush3.bf16.msra.mxu1 %v2687_v28 }
  0x30   : > { %2537 = vmatprep.subr.bf16.mxu1 %v2688_v31 }
  0x31   : > { %777 = vperm.xlu1 %2682, %v719_v23   ;;  %774 = vperm.xlu0 %2681, %v718_v24  }
  0x33   : > { %2538 = vmatpush3.bf16.msra.mxu1 %v2688_v31 }
  0x34   : > { %2539 = vmatprep.subr.bf16.mxu1 %v2689_v34 }
  0x35   : > { %783 = vperm.xlu1 %2682, %v721_v26   ;;  %780 = vperm.xlu0 %2681, %v720_v27  }
  0x37   : > { %2540 = vmatpush3.bf16.msra.mxu1 %v2689_v34 }
  0x38   : > { %2541 = vmatprep.subr.bf16.mxu1 %v2690_v37 }
  0x39   : > { %789 = vperm.xlu1 %2682, %v723_v29   ;;  %786 = vperm.xlu0 %2681, %v722_v30  }
  0x3b   : > { %2542 = vmatpush3.bf16.msra.mxu1 %v2690_v37 }
  0x3c   : > { %2559 = vmatprep.subr.bf16.mxu1 %v515_v22 }
  0x3d   : > { %795 = vperm.xlu1 %2682, %v725_v32   ;;  %792 = vperm.xlu0 %2681, %v724_v33  }
  0x3e   : > { %2544 = vmatmul.mubr.bf16.vlgmr.msra.gmra.mrb[0].mxu1 %v516_v42 }
  0x3f   : > { %2560 = vmatpush3.bf16.msra.mxu1 %v515_v22  ;;  %2547 = vmatprep.mubr.bf16.mxu1 %v517_v43 }
  0x40   : > { %2561 = vmatprep.subr.bf16.mxu1 %v516_v42 }
  0x41   : > { %801 = vperm.xlu1 %2682, %v727_v35   ;;  %798 = vperm.xlu0 %2681, %v726_v36  }
  0x43   : > { %2562 = vmatpush3.bf16.msra.mxu1 %v516_v42 }
  0x44   : > { %2563 = vmatprep.subr.bf16.mxu1 %v517_v43 }
  0x45   : > { %807 = vperm.xlu1 %2682, %v729_v38   ;;  %804 = vperm.xlu0 %2681, %v728_v39  }
  0x46   : > { %2548 = vmatmul.mubr.bf16.gmra.mrb[4].mxu1 %v518_v48 }
  0x47   : > { %2564 = vmatpush3.bf16.msra.mxu1 %v517_v43  ;;  %2551 = vmatprep.mubr.bf16.mxu1 %v519_v49  ;;  %v3037_v43 = vshrl.u32 %v741_v57, 7 }
  0x48   : > { %2565 = vmatprep.subr.bf16.mxu1 %v518_v48 }
  0x49   : > { %813 = vperm.xlu1 %2682, %v731_v40   ;;  %810 = vperm.xlu0 %2681, %v730_v41   ;;  %v957_v57 = vadd.s32 40, %v3037_v43 }
  0x4b   : > { %2566 = vmatpush3.bf16.msra.mxu1 %v518_v48  ;;  %v953_v48 = vadd.s32 8, %v3037_v43 }
  0x4c   : > { %2567 = vmatprep.subr.bf16.mxu1 %v519_v49 }
  0x4d   : > { %819 = vperm.xlu1 %2682, %v733_v44   ;;  %816 = vperm.xlu0 %2681, %v732_v45   ;;  %v974_v45 = vsub.s32 1, %v3037_v43 }
  0x4e   : > { %2552 = vmatmul.mubr.bf16.gmra.mrb[8].mxu1 %v520_v54 }
  0x4f   : > { %2568 = vmatpush3.bf16.msra.mxu1 %v519_v49  ;;  %2555 = vmatprep.mubr.bf16.mxu1 %v521_v55 }
  0x50   : > { %2569 = vmatprep.subr.bf16.mxu1 %v520_v54 }
  0x51   : > { %825 = vperm.xlu1 %2682, %v735_v46   ;;  %822 = vperm.xlu0 %2681, %v734_v47   ;;  %v740_v46 = vld [vmem:[%s3519_s2] sm:$0x3]  ;;  %v970_v47 = vsub.s32 0, %v3037_v43 }
  0x52   : > { %v3047_v49 = vrot.slane %v740_v46, %v974_v45 }
  0x53   : > { %2570 = vmatpush3.bf16.msra.mxu1 %v520_v54  ;;  %v2696_v54 = vld [vmem:[%s2817_s23 + $0x28] sm:$0xff]  }
  0x54   : > { %2571 = vmatprep.subr.bf16.mxu1 %v521_v55 }
  0x55   : > { %831 = vperm.xlu1 %2682, %v737_v50   ;;  %828 = vperm.xlu0 %2681, %v736_v51   ;;  %v3049_v50 = vrot.slane %v740_v46, %v970_v47  ;;  %v2394_v47 = vld [vmem:[%s3520_s3 + $0x18] sm:$0xff]   ;;  %v2695_v51 = vld [vmem:[%s2817_s23 + $0x20] sm:$0xff]  }
  0x56   : > { %2556 = vmatmul.mubr.bf16.gmra.mrb[12].mxu1 %v522_v56 }
  0x57   : > { %2572 = vmatpush3.bf16.msra.mxu1 %v521_v55  ;;  %v2697_v55 = vld [vmem:[%s2817_s23 + $0x30] sm:$0xff]  }
  0x58   : > { %2573 = vmatprep.subr.bf16.mxu1 %v522_v56 }
  0x59   : > { %837 = vperm.xlu1 %2682, %v739_v52   ;;  %834 = vperm.xlu0 %2681, %v738_v53   ;;  %v954_v52 = vadd.s32 16, %v3037_v43  ;;  %v955_v53 = vadd.s32 24, %v3037_v43 }
  0x5b   : > { %2574 = vmatpush3.bf16.msra.mxu1 %v522_v56  ;;  %v956_v56 = vadd.s32 32, %v3037_v43 }
  0x9c   : > { %v751_v58 = vpop.permute.xlu1 %750  ;;  %v745_v59 = vpop.permute.xlu0 %744 }
  0x9d   : > { %vm841_vm0 = vcmp.eq.s32.totalorder %v2956_v60, %v751_v58  ;;  %vm839_vm3 = vcmp.eq.s32.totalorder %v2956_v60, %v745_v59  ;;  %v2698_v58 = vld [vmem:[%s2817_s23 + $0x38] sm:$0xff]  }
  0xa0   : > { %v754_v61 = vpop.permute.xlu1 %753  ;;  %v748_v62 = vpop.permute.xlu0 %747 }
  0xa1   : > { %vm842_vm1 = vcmp.eq.s32.totalorder %v2956_v60, %v754_v61  ;;  %vm840_vm2 = vcmp.eq.s32.totalorder %v2956_v60, %v748_v62  ;;  %v959_v61 = vadd.s32 56, %v3037_v43 }
  0xa2   : > { %vm2247_vm4 = vmpackc.low %vm842_vm1, %vm841_vm0 }
  0xa3   : > { %vm2245_vm5 = vmpackc.low %vm840_vm2, %vm839_vm3 }
  0xa4   : > { %2575 = vmatprep.mubr.msk.bf16.mxu1 %vm2245_vm5, %v3527_v63  ;;  %v760_v0 = vpop.permute.xlu1 %759  ;;  %v757_v1 = vpop.permute.xlu0 %756 }
  0xa5   : > { %vm844_vm6 = vcmp.eq.s32.totalorder %v2956_v60, %v760_v0  ;;  %vm843_vm7 = vcmp.eq.s32.totalorder %v2956_v60, %v757_v1  ;;  %2576 = vmatmul.mubr.msk.bf16.vlgmr.msra.gmra.mrb[16].mxu1 %vm2247_vm4, %v3527_v63  ;;  %v3544_v0 = vmov 0  ;;  %v960_v1 = vadd.s32 64, %v3037_v43 }
  0xa6   : > { %vm2249_vm8 = vmpackc.low %vm844_vm6, %vm843_vm7 }
  0xa7   : > { %2579 = vmatprep.mubr.msk.bf16.mxu1 %vm2249_vm8, %v3527_v63 }
  0xa8   : > { %v766_v2 = vpop.permute.xlu1 %765  ;;  %v763_v3 = vpop.permute.xlu0 %762 }
  0xa9   : > { %vm846_vm9 = vcmp.eq.s32.totalorder %v2956_v60, %v766_v2  ;;  %vm845_vm10 = vcmp.eq.s32.totalorder %v2956_v60, %v763_v3  ;;  %v961_v2 = vadd.s32 72, %v3037_v43  ;;  %v3546_v3 = vmov 0 }
  0xaa   : > { %vm2251_vm11 = vmpackc.low %vm846_vm9, %vm845_vm10 }
  0xac   : > { %v772_v4 = vpop.permute.xlu1 %771  ;;  %v769_v5 = vpop.permute.xlu0 %768 }
  0xad   : > { %vm848_vm12 = vcmp.eq.s32.totalorder %v2956_v60, %v772_v4  ;;  %vm847_vm13 = vcmp.eq.s32.totalorder %v2956_v60, %v769_v5  ;;  %2580 = vmatmul.mubr.msk.bf16.gmra.mrb[20].mxu1 %vm2251_vm11, %v3527_v63  ;;  %v3548_v4 = vmov 0  ;;  %v962_v5 = vadd.s32 80, %v3037_v43 }
  0xae   : > { %vm2253_vm14 = vmpackc.low %vm848_vm12, %vm847_vm13 }
  0xaf   : > { %2583 = vmatprep.mubr.msk.bf16.mxu1 %vm2253_vm14, %v3527_v63 }
  0xb0   : > { %v778_v6 = vpop.permute.xlu1 %777  ;;  %v775_v7 = vpop.permute.xlu0 %774 }
  0xb1   : > { %vm850_vm15 = vcmp.eq.s32.totalorder %v2956_v60, %v778_v6  ;;  %vm849_vm0 = vcmp.eq.s32.totalorder %v2956_v60, %v775_v7  ;;  %v963_v6 = vadd.s32 88, %v3037_v43  ;;  %v3550_v7 = vmov 0 }
  0xb2   : > { %vm2255_vm1 = vmpackc.low %vm850_vm15, %vm849_vm0 }
  0xb4   : > { %v784_v8 = vpop.permute.xlu1 %783  ;;  %v781_v9 = vpop.permute.xlu0 %780 }
  0xb5   : > { %vm852_vm2 = vcmp.eq.s32.totalorder %v2956_v60, %v784_v8  ;;  %vm851_vm3 = vcmp.eq.s32.totalorder %v2956_v60, %v781_v9  ;;  %2584 = vmatmul.mubr.msk.bf16.gmra.mrb[24].mxu1 %vm2255_vm1, %v3527_v63  ;;  %v3552_v8 = vmov 0  ;;  %v964_v9 = vadd.s32 96, %v3037_v43 }
  0xb6   : > { %vm2257_vm4 = vmpackc.low %vm852_vm2, %vm851_vm3 }
  0xb7   : > { %2587 = vmatprep.mubr.msk.bf16.mxu1 %vm2257_vm4, %v3527_v63 }
  0xb8   : > { %v790_v10 = vpop.permute.xlu1 %789  ;;  %v787_v11 = vpop.permute.xlu0 %786 }
  0xb9   : > { %vm854_vm5 = vcmp.eq.s32.totalorder %v2956_v60, %v790_v10  ;;  %vm853_vm6 = vcmp.eq.s32.totalorder %v2956_v60, %v787_v11  ;;  %v965_v10 = vadd.s32 104, %v3037_v43 }
  0xba   : > { %vm2259_vm7 = vmpackc.low %vm854_vm5, %vm853_vm6 }
  0xbc   : > { %v796_v12 = vpop.permute.xlu1 %795  ;;  %v793_v13 = vpop.permute.xlu0 %792 }
  0xbd   : > { %vm856_vm8 = vcmp.eq.s32.totalorder %v2956_v60, %v796_v12  ;;  %vm855_vm9 = vcmp.eq.s32.totalorder %v2956_v60, %v793_v13  ;;  %2588 = vmatmul.mubr.msk.bf16.gmra.mrb[28].mxu1 %vm2259_vm7, %v3527_v63  ;;  %v966_v13 = vadd.s32 112, %v3037_v43 }
  0xbe   : > { %vm2261_vm10 = vmpackc.low %vm856_vm8, %vm855_vm9 }
  0xbf   : > { %2591 = vmatprep.mubr.msk.bf16.mxu1 %vm2261_vm10, %v3527_v63 }
  0xc0   : > { %v802_v14 = vpop.permute.xlu1 %801  ;;  %v799_v15 = vpop.permute.xlu0 %798 }
  0xc1   : > { %vm858_vm11 = vcmp.eq.s32.totalorder %v2956_v60, %v802_v14  ;;  %vm857_vm12 = vcmp.eq.s32.totalorder %v2956_v60, %v799_v15  ;;  %v967_v14 = vadd.s32 120, %v3037_v43 }
  0xc2   : > { %vm2263_vm13 = vmpackc.low %vm858_vm11, %vm857_vm12 }
  0xc4   : > { %v808_v16 = vpop.permute.xlu1 %807  ;;  %v805_v17 = vpop.permute.xlu0 %804 }
  0xc5   : > { %vm860_vm14 = vcmp.eq.s32.totalorder %v2956_v60, %v808_v16  ;;  %vm859_vm15 = vcmp.eq.s32.totalorder %v2956_v60, %v805_v17  ;;  %2592 = vmatmul.mubr.msk.bf16.gmra.mrb[32].mxu1 %vm2263_vm13, %v3527_v63  ;;  %v2392_v16 = vld [vmem:[%s3520_s3 + $0x8] sm:$0xff]  }
  0xc6   : > { %vm2265_vm0 = vmpackc.low %vm860_vm14, %vm859_vm15 }
  0xc7   : > { %2595 = vmatprep.mubr.msk.bf16.mxu1 %vm2265_vm0, %v3527_v63  ;;  %vm977_vm0 = vcmp.eq.s32.totalorder %v3037_v43, %v3047_v49 }
  0xc8   : > { %v814_v18 = vpop.permute.xlu1 %813  ;;  %v811_v19 = vpop.permute.xlu0 %810 }
  0xc9   : > { %vm862_vm1 = vcmp.eq.s32.totalorder %v2956_v60, %v814_v18  ;;  %vm861_vm2 = vcmp.eq.s32.totalorder %v2956_v60, %v811_v19  ;;  %v2329_v18 = vld [vmem:[%s3520_s3] sm:$0xff]   ;;  %v2334_v19 = vunpack.c.l.bf16 %v2392_v16 }
  0xca   : > { %vm2267_vm3 = vmpackc.low %vm862_vm1, %vm861_vm2  ;;  %vm979_vm1 = vcmp.eq.s32.totalorder %v953_v48, %v3047_v49 }
  0xcb   : > { %vm2277_vm2 = vmpackc.low %vm979_vm1, %vm977_vm0 }
  0xcc   : > { %v820_v20 = vpop.permute.xlu1 %819  ;;  %v817_v21 = vpop.permute.xlu0 %816  ;;  %2278 = vmatprep.mubr.msk.bf16.mxu0 %vm2277_vm2, %v3527_v63 }
  0xcd   : > { %vm864_vm4 = vcmp.eq.s32.totalorder %v2956_v60, %v820_v20  ;;  %vm863_vm5 = vcmp.eq.s32.totalorder %v2956_v60, %v817_v21  ;;  %2596 = vmatmul.mubr.msk.bf16.gmra.mrb[36].mxu1 %vm2267_vm3, %v3527_v63  ;;  %vm976_vm3 = vcmp.eq.s32.totalorder %v3037_v43, %v3049_v50  ;;  %v2335_v20 = vunpack.c.h.bf16 %v2392_v16  ;;  %v2395_v16 = vld [vmem:[%s3520_s3 + $0x20] sm:$0xff]  }
  0xce   : > { %vm2269_vm6 = vmpackc.low %vm864_vm4, %vm863_vm5  ;;  %vm978_vm4 = vcmp.eq.s32.totalorder %v953_v48, %v3049_v50 }
  0xcf   : > { %2599 = vmatprep.mubr.msk.bf16.mxu1 %vm2269_vm6, %v3527_v63  ;;  %vm3058_vm5 = vmpackc.low %vm978_vm4, %vm976_vm3  ;;  %vm981_vm6 = vcmp.eq.s32.totalorder %v954_v52, %v3047_v49  ;;  %vm991_vm3 = vcmp.eq.s32.totalorder %v959_v61, %v3047_v49 }
  0xd0   : > { %v826_v22 = vpop.permute.xlu1 %825  ;;  %v823_v23 = vpop.permute.xlu0 %822 }
  0xd1   : > { %vm866_vm7 = vcmp.eq.s32.totalorder %v2956_v60, %v826_v22  ;;  %vm865_vm8 = vcmp.eq.s32.totalorder %v2956_v60, %v823_v23  ;;  %v2330_v22 = vunpack.c.l.bf16 %v2329_v18  ;;  %v2331_v23 = vunpack.c.h.bf16 %v2329_v18 }
  0xd2   : > { %vm2271_vm9 = vmpackc.low %vm866_vm7, %vm865_vm8  ;;  %vm983_vm7 = vcmp.eq.s32.totalorder %v955_v53, %v3047_v49  ;;  %vm980_vm8 = vcmp.eq.s32.totalorder %v954_v52, %v3049_v50  ;;  %v2342_v52 = vunpack.c.l.bf16 %v2394_v47 }
  0xd4   : > { %v832_v24 = vpop.permute.xlu1 %831  ;;  %v829_v25 = vpop.permute.xlu0 %828 }
  0xd5   : > { %vm868_vm10 = vcmp.eq.s32.totalorder %v2956_v60, %v832_v24  ;;  %vm867_vm11 = vcmp.eq.s32.totalorder %v2956_v60, %v829_v25  ;;  %2600 = vmatmul.mubr.msk.bf16.gmra.mrb[40].mxu1 %vm2271_vm9, %v3527_v63  ;;  %vm982_vm9 = vcmp.eq.s32.totalorder %v955_v53, %v3049_v50  ;;  %v2343_v53 = vunpack.c.h.bf16 %v2394_v47 }
  0xd6   : > { %vm2273_vm12 = vmpackc.low %vm868_vm10, %vm867_vm11 }
  0xd7   : > { %2603 = vmatprep.mubr.msk.bf16.mxu1 %vm2273_vm12, %v3527_v63  ;;  %vm3068_vm10 = vmpackc.low %vm983_vm7, %vm981_vm6  ;;  %vm985_vm12 = vcmp.eq.s32.totalorder %v956_v56, %v3047_v49  ;;  %vm990_vm6 = vcmp.eq.s32.totalorder %v959_v61, %v3049_v50 }
  0xd8   : > { %v838_v26 = vpop.permute.xlu1 %837  ;;  %v835_v27 = vpop.permute.xlu0 %834  ;;  %vm3072_vm11 = vmpackc.low %vm982_vm9, %vm980_vm8  ;;  %vm993_vm9 = vcmp.eq.s32.totalorder %v960_v1, %v3047_v49 }
  0xd9   : > { %vm870_vm13 = vcmp.eq.s32.totalorder %v2956_v60, %v838_v26  ;;  %vm869_vm14 = vcmp.eq.s32.totalorder %v2956_v60, %v835_v27  ;;  %v958_v60 = vadd.s32 48, %v3037_v43 }
  0xda   : > { %vm2275_vm15 = vmpackc.low %vm870_vm13, %vm869_vm14  ;;  %vm987_vm13 = vcmp.eq.s32.totalorder %v957_v57, %v3047_v49  ;;  %vm984_vm14 = vcmp.eq.s32.totalorder %v956_v56, %v3049_v50 }
  0xdb   : > { %vm3082_vm0 = vmpackc.low %vm987_vm13, %vm985_vm12  ;;  %vm989_vm2 = vcmp.eq.s32.totalorder %v958_v60, %v3047_v49  ;;  %vm988_vm4 = vcmp.eq.s32.totalorder %v958_v60, %v3049_v50  ;;  %vm995_vm12 = vcmp.eq.s32.totalorder %v961_v2, %v3047_v49  ;;  %vm992_vm13 = vcmp.eq.s32.totalorder %v960_v1, %v3049_v50 }
  0xdc   : > { %vm3096_vm7 = vmpackc.low %vm991_vm3, %vm989_vm2  ;;  %vm997_vm3 = vcmp.eq.s32.totalorder %v962_v5, %v3047_v49 }
  0xdd   : > { %2604 = vmatmul.mubr.msk.bf16.gmra.mrb[44].mxu1 %vm2275_vm15, %v3527_v63  ;;  %vm986_vm15 = vcmp.eq.s32.totalorder %v957_v57, %v3049_v50  ;;  %vm3100_vm8 = vmpackc.low %vm990_vm6, %vm988_vm4  ;;  %vm999_vm4 = vcmp.eq.s32.totalorder %v963_v6, %v3047_v49  ;;  %vm996_vm6 = vcmp.eq.s32.totalorder %v962_v5, %v3049_v50  ;;  %v2400_v63 = vld [vmem:[%s3520_s3 + $0x48] sm:$0xff]  }
  0xde   : > { %vm3086_vm1 = vmpackc.low %vm986_vm15, %vm984_vm14  ;;  %v3545_v0 = vsel %vm3100_vm8, 4294967295, %v3544_v0  ;;  %vm994_vm14 = vcmp.eq.s32.totalorder %v961_v2, %v3049_v50  ;;  %vm998_vm8 = vcmp.eq.s32.totalorder %v963_v6, %v3049_v50 }
  0xdf   : > { %vm3110_vm15 = vmpackc.low %vm995_vm12, %vm993_vm9 }
  0xe0   : > { %v3547_v3 = vsel %vm3110_vm15, 4294967295, %v3546_v3  ;;  %vm3114_vm2 = vmpackc.low %vm994_vm14, %vm992_vm13  ;;  %vm1001_vm13 = vcmp.eq.s32.totalorder %v964_v9, %v3047_v49  ;;  %vm1003_vm14 = vcmp.eq.s32.totalorder %v965_v10, %v3047_v49  ;;  %vm1002_vm15 = vcmp.eq.s32.totalorder %v965_v10, %v3049_v50 }
  0xe1   : > { %v3549_v4 = vsel %vm3114_vm2, 4294967295, %v3548_v4  ;;  %vm3124_vm9 = vmpackc.low %vm999_vm4, %vm997_vm3  ;;  %vm1000_vm2 = vcmp.eq.s32.totalorder %v964_v9, %v3049_v50  ;;  %vm1005_vm4 = vcmp.eq.s32.totalorder %v966_v13, %v3047_v49 }
  0xe2   : > { %v3551_v7 = vsel %vm3124_vm9, 4294967295, %v3550_v7  ;;  %vm3128_vm12 = vmpackc.low %vm998_vm8, %vm996_vm6  ;;  %vm1007_vm6 = vcmp.eq.s32.totalorder %v967_v14, %v3047_v49  ;;  %vm1006_vm9 = vcmp.eq.s32.totalorder %v967_v14, %v3049_v50  ;;  %v2393_v49 = vld [vmem:[%s3520_s3 + $0x10] sm:$0xff]  }
  0xe3   : > { %v3553_v8 = vsel %vm3128_vm12, 4294967295, %v3552_v8  ;;  %vm3138_vm3 = vmpackc.low %vm1003_vm14, %vm1001_vm13  ;;  %vm1004_vm12 = vcmp.eq.s32.totalorder %v966_v13, %v3049_v50  ;;  %v2338_v57 = vunpack.c.l.bf16 %v2393_v49  ;;  %v2339_v60 = vunpack.c.h.bf16 %v2393_v49  ;;  %v2396_v13 = vld [vmem:[%s3520_s3 + $0x28] sm:$0xff]  }
  0xe4   : > { %vm3142_vm8 = vmpackc.low %vm1002_vm15, %vm1000_vm2 }
  0xe5   : > { %vm3152_vm13 = vmpackc.low %vm1007_vm6, %vm1005_vm4 }
  0xe6   : > { %vm3159_vm15 = vmpackc.low %vm1006_vm9, %vm1004_vm12 }
 0x111   : > { %v3006_v28 = vpop.f32.mrb[0].mxu1 }
 0x112   : > { %v3008_v29 = vpop.f32.mrb[1].mxu1 }
 0x113   : > { %v3010_v30 = vpop.f32.mrb[2].mxu1 }
 0x114   : > { %v3012_v31 = vpop.f32.mrb[3].mxu1 }
 0x119   : > { %v3014_v32 = vpop.f32.mrb[4].mxu1 }
 0x11a   : > { %v3016_v33 = vpop.f32.mrb[5].mxu1 }
 0x11b   : > { %v3018_v34 = vpop.f32.mrb[6].mxu1 }
 0x11c   : > { %v3020_v35 = vpop.f32.mrb[7].mxu1 }
 0x121   : > { %v3022_v36 = vpop.f32.mrb[8].mxu1 }
 0x122   : > { %v3024_v37 = vpop.f32.mrb[9].mxu1 }
 0x123   : > { %v3026_v38 = vpop.f32.mrb[10].mxu1 }
 0x124   : > { %v3028_v39 = vpop.f32.mrb[11].mxu1 }
 0x129   : > { %v3030_v40 = vpop.f32.mrb[12].mxu1 }
 0x12a   : > { %v3032_v41 = vpop.f32.mrb[13].mxu1 }
 0x12b   : > { %3529 = vst [vmem:[#allocation8_spill] sm:$0xff] %v3032_v41  ;;  %v3034_v42 = vpop.f32.mrb[14].mxu1 }
 0x12c   : > { %3530 = vst [vmem:[#allocation9_spill] sm:$0xff] %v3034_v42  ;;  %v3039_v44 = vpop.f32.mrb[15].mxu1 }
 0x12d   : > { %3531 = vst [vmem:[#allocation10_spill] sm:$0xff] %v3039_v44 }
 0x178   : > { %v2577_v21 = vpop.f32.mrb[16].mxu1 }
 0x179   : > { %v1122_v24 = vpop.f32.mrb[17].mxu1  ;;  %v3166_v26 = vmul.f32 %v2577_v21, %v2334_v19  ;;  %v2350_v19 = vunpack.c.l.bf16 %v2396_v13 }
 0x17a   : > { %v2578_v25 = vpop.f32.mrb[18].mxu1  ;;  %v3170_v45 = vmul.f32 %v2330_v22, %v1122_v24  ;;  %v2346_v22 = vunpack.c.l.bf16 %v2395_v16 }
 0x17b   : > { %v3168_v27 = vmul.f32 %v2578_v25, %v2335_v20  ;;  %v1125_v43 = vpop.f32.mrb[19].mxu1  ;;  %v2351_v20 = vunpack.c.h.bf16 %v2396_v13 }
 0x17c   : > { %v3172_v46 = vmul.f32 %v2331_v23, %v1125_v43  ;;  %v2347_v23 = vunpack.c.h.bf16 %v2395_v16 }
 0x180   : > { %v2581_v56 = vpop.f32.mrb[20].mxu1 }
 0x181   : > { %v1138_v61 = vpop.f32.mrb[21].mxu1  ;;  %v3184_v2 = vmul.f32 %v2581_v56, %v2342_v52  ;;  %v2398_v56 = vld [vmem:[%s3520_s3 + $0x38] sm:$0xff]  }
 0x182   : > { %v2582_v1 = vpop.f32.mrb[22].mxu1  ;;  %v3188_v9 = vmul.f32 %v2338_v57, %v1138_v61 }
 0x183   : > { %v3186_v5 = vmul.f32 %v2582_v1, %v2343_v53  ;;  %v1141_v6 = vpop.f32.mrb[23].mxu1  ;;  %v2358_v1 = vunpack.c.l.bf16 %v2398_v56 }
 0x184   : > { %v3190_v10 = vmul.f32 %v2339_v60, %v1141_v6  ;;  %v2397_v60 = vld [vmem:[%s3520_s3 + $0x30] sm:$0xff]   ;;  %v2359_v6 = vunpack.c.h.bf16 %v2398_v56  ;;  %v2402_v56 = vld [vmem:[%s3520_s3 + $0x58] sm:$0xff]  }
 0x185   : > { %v2354_v16 = vunpack.c.l.bf16 %v2397_v60  ;;  %v2374_v44 = vunpack.c.l.bf16 %v2402_v56  ;;  %v2375_v42 = vunpack.c.h.bf16 %v2402_v56  ;;  %v3563_v56 = vpack.c.bf16 %v3168_v27, %v3166_v26 }
 0x188   : > { %v2585_v21 = vpop.f32.mrb[24].mxu1 }
 0x189   : > { %v1154_v24 = vpop.f32.mrb[25].mxu1  ;;  %v3202_v43 = vmul.f32 %v2585_v21, %v2350_v19  ;;  %v2355_v19 = vunpack.c.h.bf16 %v2397_v60  ;;  %v2399_v60 = vld [vmem:[%s3520_s3 + $0x40] sm:$0xff]  }
 0x18a   : > { %v2586_v25 = vpop.f32.mrb[26].mxu1  ;;  %v3206_v52 = vmul.f32 %v2346_v22, %v1154_v24 }
 0x18b   : > { %v3204_v47 = vmul.f32 %v2586_v25, %v2351_v20  ;;  %v1157_v49 = vpop.f32.mrb[27].mxu1 }
 0x18c   : > { %v3208_v53 = vmul.f32 %v2347_v23, %v1157_v49 }
 0x190   : > { %v2589_v13 = vpop.f32.mrb[28].mxu1 }
 0x191   : > { %v1170_v20 = vpop.f32.mrb[29].mxu1  ;;  %v3220_v22 = vmul.f32 %v2589_v13, %v2358_v1  ;;  %v2367_v13 = vunpack.c.h.bf16 %v2400_v63  ;;  %v2401_v1 = vld [vmem:[%s3520_s3 + $0x50] sm:$0xff]  }
 0x192   : > { %v2590_v21 = vpop.f32.mrb[30].mxu1  ;;  %v3224_v25 = vmul.f32 %v2354_v16, %v1170_v20  ;;  %v2362_v20 = vunpack.c.l.bf16 %v2399_v60  ;;  %v2370_v41 = vunpack.c.l.bf16 %v2401_v1 }
 0x193   : > { %v3222_v23 = vmul.f32 %v2590_v21, %v2359_v6  ;;  %v1173_v24 = vpop.f32.mrb[31].mxu1  ;;  %v2366_v6 = vunpack.c.l.bf16 %v2400_v63 }
 0x194   : > { %v3226_v49 = vmul.f32 %v2355_v19, %v1173_v24  ;;  %v2363_v19 = vunpack.c.h.bf16 %v2399_v60 }
 0x198   : > { %v2593_v16 = vpop.f32.mrb[32].mxu1 }
 0x199   : > { %v1186_v21 = vpop.f32.mrb[33].mxu1  ;;  %v1331_v57 = vmul.f32 %v2593_v16, %v2366_v6  ;;  %v2371_v6 = vunpack.c.h.bf16 %v2401_v1 }
 0x19a   : > { %v2594_v24 = vpop.f32.mrb[34].mxu1  ;;  %v1329_v18 = vmul.f32 %v2362_v20, %v1186_v21 }
 0x19b   : > { %v1332_v61 = vmul.f32 %v2594_v24, %v2367_v13  ;;  %v1189_v14 = vpop.f32.mrb[35].mxu1 }
 0x19c   : > { %v1330_v48 = vmul.f32 %v2363_v19, %v1189_v14  ;;  %v3562_v14 = vpack.c.bf16 %v3172_v46, %v3170_v45  ;;  %v2403_v45 = vld [vmem:[%s3520_s3 + $0x60] sm:$0xff]  }
 0x19d   : > { %v1370_v50 = vpack.c.bf16 %v1332_v61, %v1331_v57  ;;  %v2379_v1 = vunpack.c.h.bf16 %v2403_v45 }
 0x19e   : > { %v1369_v63 = vpack.c.bf16 %v1330_v48, %v1329_v18  ;;  %v2404_v48 = vld [vmem:[%s3520_s3 + $0x68] sm:$0xff]  }
 0x1a0   : > { %v2597_v60 = vpop.f32.mrb[36].mxu1  ;;  %2447 = vmatprep.subr.bf16.mxu0 %v1369_v63  ;;  %v3564_v63 = vpack.c.bf16 %v3190_v10, %v3188_v9  ;;  %v2405_v9 = vld [vmem:[%s3520_s3 + $0x70] sm:$0xff]  }
 0x1a1   : > { %v1202_v13 = vpop.f32.mrb[37].mxu1  ;;  %2448 = vmatpush3.bf16.msra.mxu0 %v3562_v14  ;;  %v1335_v20 = vmul.f32 %v2597_v60, %v2374_v44  ;;  %v2383_v44 = vunpack.c.h.bf16 %v2404_v48 }
 0x1a2   : > { %v2598_v16 = vpop.f32.mrb[38].mxu1  ;;  %2449 = vmatprep.subr.bf16.mxu0 %v1370_v50  ;;  %v1333_v19 = vmul.f32 %v2370_v41, %v1202_v13  ;;  %v2382_v50 = vunpack.c.l.bf16 %v2404_v48  ;;  %v2378_v41 = vunpack.c.l.bf16 %v2403_v45  ;;  %v2386_v48 = vunpack.c.l.bf16 %v2405_v9 }
 0x1a3   : > { %v1336_v57 = vmul.f32 %v2598_v16, %v2375_v42  ;;  %v1205_v61 = vpop.f32.mrb[39].mxu1  ;;  %v2406_v16 = vld [vmem:[%s3520_s3 + $0x78] sm:$0xff]   ;;  %v3566_v45 = vpack.c.bf16 %v3208_v53, %v3206_v52  ;;  %v3568_v52 = vpack.c.bf16 %v3226_v49, %v3224_v25  ;;  %v2691_v53 = vld [vmem:[%s2817_s23] sm:$0xff]  }
 0x1a4   : > { %v1334_v21 = vmul.f32 %v2371_v6, %v1205_v61  ;;  %v2390_v61 = vunpack.c.l.bf16 %v2406_v16 }
 0x1a5   : > { %v1372_v18 = vpack.c.bf16 %v1336_v57, %v1335_v20  ;;  %2450 = vmatpush3.bf16.msra.mxu0 %v3563_v56  ;;  %v3565_v57 = vpack.c.bf16 %v3186_v5, %v3184_v2 }
 0x1a6   : > { %v1371_v46 = vpack.c.bf16 %v1334_v21, %v1333_v19  ;;  %v2391_v19 = vunpack.c.h.bf16 %v2406_v16 }
 0x1a8   : > { %v2601_v42 = vpop.f32.mrb[40].mxu1  ;;  %2451 = vmatprep.subr.bf16.mxu0 %v1371_v46 }
 0x1a9   : > { %v1218_v24 = vpop.f32.mrb[41].mxu1  ;;  %2452 = vmatpush3.bf16.msra.mxu0 %v3564_v63  ;;  %v1339_v26 = vmul.f32 %v2601_v42, %v2382_v50  ;;  %v3569_v63 = vpack.c.bf16 %v3222_v23, %v3220_v22 }
 0x1aa   : > { %v2602_v60 = vpop.f32.mrb[42].mxu1  ;;  %2453 = vmatprep.subr.bf16.mxu0 %v1372_v18  ;;  %v1337_v13 = vmul.f32 %v2378_v41, %v1218_v24  ;;  %v2387_v18 = vunpack.c.h.bf16 %v2405_v9 }
 0x1ab   : > { %v1340_v27 = vmul.f32 %v2602_v60, %v2383_v44  ;;  %v1221_v6 = vpop.f32.mrb[43].mxu1  ;;  %v2692_v60 = vld [vmem:[%s2817_s23 + $0x8] sm:$0xff]  }
 0x1ac   : > { %v1338_v14 = vmul.f32 %v2379_v1, %v1221_v6  ;;  %v3567_v1 = vpack.c.bf16 %v3204_v47, %v3202_v43  ;;  %v2693_v43 = vld [vmem:[%s2817_s23 + $0x10] sm:$0xff]   ;;  %v2694_v47 = vld [vmem:[%s2817_s23 + $0x18] sm:$0xff]   ;;  %s1988_s23 = sadd.s32 1, %s2717_s30 }
 0x1ad   : > { %v1374_v20 = vpack.c.bf16 %v1340_v27, %v1339_v26  ;;  %2454 = vmatpush3.bf16.msra.mxu0 %v3565_v57  ;;  %v3570_v26 = vmov 1.0|1.0   ;;  %p2320_p6 = scmp.ge.s32.totalorder %s1988_s23, 2 }
 0x1ae   : > { %v1373_v10 = vpack.c.bf16 %v1338_v14, %v1337_v13 }
 0x1b0   : > { %v2605_v21 = vpop.f32.mrb[44].mxu1  ;;  %2455 = vmatprep.subr.bf16.mxu0 %v1373_v10 }
 0x1b1   : > { %v1234_v56 = vpop.f32.mrb[45].mxu1  ;;  %2456 = vmatpush3.bf16.msra.mxu0 %v3566_v45  ;;  %v1343_v2 = vmul.f32 %v2605_v21, %v2390_v61 }
 0x1b2   : > { %v2606_v46 = vpop.f32.mrb[46].mxu1  ;;  %2457 = vmatprep.subr.bf16.mxu0 %v1374_v20  ;;  %v1341_v44 = vmul.f32 %v2386_v48, %v1234_v56 }
 0x1b3   : > { %v1344_v5 = vmul.f32 %v2606_v46, %v2391_v19  ;;  %v1237_v50 = vpop.f32.mrb[47].mxu1 }
 0x1b4   : > { %v1342_v42 = vmul.f32 %v2387_v18, %v1237_v50 }
 0x1b5   : > { %v1376_v41 = vpack.c.bf16 %v1344_v5, %v1343_v2  ;;  %2458 = vmatpush3.bf16.msra.mxu0 %v3567_v1 }
 0x1b6   : > { %v1375_v24 = vpack.c.bf16 %v1342_v42, %v1341_v44 }
 0x1b8   : > { %2459 = vmatprep.subr.bf16.mxu0 %v1375_v24 }
 0x1b9   : > { %2460 = vmatpush3.bf16.msra.mxu0 %v3568_v52 }
 0x1ba   : > { %2461 = vmatprep.subr.bf16.mxu0 %v1376_v41 }
 0x1bd   : > { %2462 = vmatpush3.bf16.msra.mxu0 %v3569_v63 }
 0x1be   : > { %2607 = vmatprep.subr.bf16.mxu0 %v2691_v53 }
 0x1c0   : > { %2280 = vmatmul.mubr.msk.bf16.vlgmr.msra.gmra.mrb[0].mxu0 %vm3058_vm5, %v3570_v26  ;;  %vm3571_vm5 = vnez %v3545_v0 }
 0x1c1   : > { %2282 = vmatprep.mubr.msk.bf16.mxu0 %vm3068_vm10, %v3570_v26  ;;  %2608 = vmatpush3.bf16.msra.mxu0 %v2691_v53  ;;  %vm3572_vm10 = vnez %v3547_v3 }
 0x1c2   : > { %2609 = vmatprep.subr.bf16.mxu0 %v2692_v60 }
 0x1c5   : > { %2610 = vmatpush3.bf16.msra.mxu0 %v2692_v60 }
 0x1c6   : > { %2611 = vmatprep.subr.bf16.mxu0 %v2693_v43 }
 0x1c8   : > { %2284 = vmatmul.mubr.msk.bf16.gmra.mrb[4].mxu0 %vm3072_vm11, %v3570_v26  ;;  %vm3573_vm11 = vnez %v3549_v4 }
 0x1c9   : > { %2286 = vmatprep.mubr.msk.bf16.mxu0 %vm3082_vm0, %v3570_v26  ;;  %2612 = vmatpush3.bf16.msra.mxu0 %v2693_v43  ;;  %vm3574_vm0 = vnez %v3551_v7 }
 0x1ca   : > { %2613 = vmatprep.subr.bf16.mxu0 %v2694_v47 }
 0x1cd   : > { %2614 = vmatpush3.bf16.msra.mxu0 %v2694_v47 }
 0x1ce   : > { %2615 = vmatprep.subr.bf16.mxu0 %v2695_v51 }
 0x1d0   : > { %2288 = vmatmul.mubr.msk.bf16.gmra.mrb[8].mxu0 %vm3086_vm1, %v3570_v26  ;;  %vm3575_vm1 = vnez %v3553_v8 }
 0x1d1   : > { %2290 = vmatprep.mubr.msk.bf16.mxu0 %vm3096_vm7, %v3570_v26  ;;  %2616 = vmatpush3.bf16.msra.mxu0 %v2695_v51 }
 0x1d2   : > { %2617 = vmatprep.subr.bf16.mxu0 %v2696_v54 }
 0x1d5   : > { %2618 = vmatpush3.bf16.msra.mxu0 %v2696_v54 }
 0x1d6   : > { %2619 = vmatprep.subr.bf16.mxu0 %v2697_v55 }
 0x1d8   : > { %2292 = vmatmul.mubr.msk.bf16.gmra.mrb[12].mxu0 %vm3571_vm5, %v3570_v26 }
 0x1d9   : > { %2294 = vmatprep.mubr.msk.bf16.mxu0 %vm3572_vm10, %v3570_v26  ;;  %2620 = vmatpush3.bf16.msra.mxu0 %v2697_v55 }
 0x1da   : > { %2621 = vmatprep.subr.bf16.mxu0 %v2698_v58 }
 0x1dd   : > { %2622 = vmatpush3.bf16.msra.mxu0 %v2698_v58 }
 0x1e0   : > { %2296 = vmatmul.mubr.msk.bf16.gmra.mrb[16].mxu0 %vm3573_vm11, %v3570_v26 }
 0x1e1   : > { %2298 = vmatprep.mubr.msk.bf16.mxu0 %vm3574_vm0, %v3570_v26 }
 0x1e8   : > { %2300 = vmatmul.mubr.msk.bf16.gmra.mrb[20].mxu0 %vm3575_vm1, %v3570_v26 }
 0x1e9   : > { %2302 = vmatprep.mubr.msk.bf16.mxu0 %vm3138_vm3, %v3570_v26 }
 0x1f0   : > { %2304 = vmatmul.mubr.msk.bf16.gmra.mrb[24].mxu0 %vm3142_vm8, %v3570_v26 }
 0x1f1   : > { %2306 = vmatprep.mubr.msk.bf16.mxu0 %vm3152_vm13, %v3570_v26 }
 0x1f8   : > { %2308 = vmatmul.mubr.msk.bf16.gmra.mrb[28].mxu0 %vm3159_vm15, %v3570_v26 }
 0x293   : > { %v2463_v59 = vpop.f32.mrb[0].mxu0 }
 0x294   : > { %v2464_v62 = vpop.f32.mrb[1].mxu0 }
 0x295   : > { %v2465_v0 = vadd.f32 %v2464_v62, %v2463_v59  ;;  %v2466_v3 = vpop.f32.mrb[2].mxu0 }
 0x296   : > { %v2467_v4 = vpop.f32.mrb[3].mxu0 }
 0x297   : > { %v2468_v7 = vadd.f32 %v2467_v4, %v2466_v3 }
 0x299   : > { %v1541_v8 = vpack.c.bf16 %v2468_v7, %v2465_v0 }
 0x29b   : > { %v2469_v11 = vpop.f32.mrb[4].mxu0  ;;  %2623 = vmatprep.mubr.bf16.mxu0 %v1541_v8  ;;  %v3339_v8 = vld [vmem:[%s422_s17] ss:$0 sm:$0xff] }
 0x29c   : > { %v2470_v12 = vpop.f32.mrb[5].mxu0 }
 0x29d   : > { %v2471_v15 = vadd.f32 %v2470_v12, %v2469_v11  ;;  %v2472_v17 = vpop.f32.mrb[6].mxu0 }
 0x29e   : > { %v2473_v22 = vpop.f32.mrb[7].mxu0 }
 0x29f   : > { %v2474_v23 = vadd.f32 %v2473_v22, %v2472_v17 }
 0x2a1   : > { %v1542_v25 = vpack.c.bf16 %v2474_v23, %v2471_v15 }
 0x2a3   : > { %v2475_v49 = vpop.f32.mrb[8].mxu0  ;;  %2624 = vmatmul.mubr.bf16.vlgmr.msra.gmra.mrb[32].mxu0 %v1542_v25 }
 0x2a4   : > { %v2476_v27 = vpop.f32.mrb[9].mxu0 }
 0x2a5   : > { %v2477_v6 = vadd.f32 %v2476_v27, %v2475_v49  ;;  %v2478_v13 = vpop.f32.mrb[10].mxu0 }
 0x2a6   : > { %v2479_v14 = vpop.f32.mrb[11].mxu0 }
 0x2a7   : > { %v2480_v16 = vadd.f32 %v2479_v14, %v2478_v13 }
 0x2a9   : > { %v1543_v20 = vpack.c.bf16 %v2480_v16, %v2477_v6 }
 0x2ab   : > { %v2481_v57 = vpop.f32.mrb[12].mxu0  ;;  %2627 = vmatprep.mubr.bf16.mxu0 %v1543_v20 }
 0x2ac   : > { %v2482_v9 = vpop.f32.mrb[13].mxu0 }
 0x2ad   : > { %v2483_v10 = vadd.f32 %v2482_v9, %v2481_v57  ;;  %v2484_v61 = vpop.f32.mrb[14].mxu0 }
 0x2ae   : > { %v2485_v19 = vpop.f32.mrb[15].mxu0 }
 0x2af   : > { %v2486_v21 = vadd.f32 %v2485_v19, %v2484_v61 }
 0x2b1   : > { %v1544_v48 = vpack.c.bf16 %v2486_v21, %v2483_v10 }
 0x2b3   : > { %v2487_v18 = vpop.f32.mrb[16].mxu0  ;;  %2628 = vmatmul.mubr.bf16.gmra.mrb[36].mxu0 %v1544_v48 }
 0x2b4   : > { %v2488_v56 = vpop.f32.mrb[17].mxu0 }
 0x2b5   : > { %v2489_v45 = vadd.f32 %v2488_v56, %v2487_v18  ;;  %v2490_v46 = vpop.f32.mrb[18].mxu0 }
 0x2b6   : > { %v2491_v2 = vpop.f32.mrb[19].mxu0 }
 0x2b7   : > { %v2492_v5 = vadd.f32 %v2491_v2, %v2490_v46 }
 0x2b9   : > { %v1545_v50 = vpack.c.bf16 %v2492_v5, %v2489_v45 }
 0x2bb   : > { %v2493_v44 = vpop.f32.mrb[20].mxu0  ;;  %2631 = vmatprep.mubr.bf16.mxu0 %v1545_v50 }
 0x2bc   : > { %v2494_v42 = vpop.f32.mrb[21].mxu0 }
 0x2bd   : > { %v2495_v41 = vadd.f32 %v2494_v42, %v2493_v44  ;;  %v2496_v1 = vpop.f32.mrb[22].mxu0 }
 0x2be   : > { %v2497_v24 = vpop.f32.mrb[23].mxu0 }
 0x2bf   : > { %v2498_v52 = vadd.f32 %v2497_v24, %v2496_v1 }
 0x2c1   : > { %v1546_v53 = vpack.c.bf16 %v2498_v52, %v2495_v41 }
 0x2c3   : > { %v2499_v63 = vpop.f32.mrb[24].mxu0  ;;  %2632 = vmatmul.mubr.bf16.gmra.mrb[40].mxu0 %v1546_v53 }
 0x2c4   : > { %v2500_v60 = vpop.f32.mrb[25].mxu0 }
 0x2c5   : > { %v2501_v26 = vadd.f32 %v2500_v60, %v2499_v63  ;;  %v2502_v43 = vpop.f32.mrb[26].mxu0 }
 0x2c6   : > { %v2503_v47 = vpop.f32.mrb[27].mxu0 }
 0x2c7   : > { %v2504_v51 = vadd.f32 %v2503_v47, %v2502_v43 }
 0x2c9   : > { %v1547_v54 = vpack.c.bf16 %v2504_v51, %v2501_v26 }
 0x2cb   : > { %v2505_v55 = vpop.f32.mrb[28].mxu0  ;;  %2635 = vmatprep.mubr.bf16.mxu0 %v1547_v54 }
 0x2cc   : > { %v2506_v58 = vpop.f32.mrb[29].mxu0 }
 0x2cd   : > { %v2507_v59 = vadd.f32 %v2506_v58, %v2505_v55  ;;  %v2508_v62 = vpop.f32.mrb[30].mxu0 }
 0x2ce   : > { %v2509_v0 = vpop.f32.mrb[31].mxu0 }
 0x2cf   : > { %v2510_v3 = vadd.f32 %v2509_v0, %v2508_v62 }
 0x2d1   : > { %v1548_v4 = vpack.c.bf16 %v2510_v3, %v2507_v59 }
 0x2d3   : > { %2636 = vmatmul.mubr.bf16.gmra.mrb[44].mxu0 %v1548_v4 }
 0x376   : > { %v2625_v7 = vpop.f32.mrb[32].mxu0 }
 0x377   : > { %v1712_v11 = vadd.f32 %v2625_v7, %v3006_v28  ;;  %v1647_v12 = vpop.f32.mrb[33].mxu0 }
 0x378   : > { %v1710_v15 = vadd.f32 %v1647_v12, %v3008_v29  ;;  %v2626_v17 = vpop.f32.mrb[34].mxu0 }
 0x379   : > { %v3344_v22 = vadd.f32 %v3339_v8, %v1712_v11  ;;  %v1713_v23 = vadd.f32 %v2626_v17, %v3010_v30  ;;  %v1650_v25 = vpop.f32.mrb[35].mxu0 }
 0x37a   : > { %v3348_v49 = vadd.f32 %v3339_v8, %v1710_v15  ;;  %v1711_v27 = vadd.f32 %v1650_v25, %v3012_v31 }
 0x37b   : > { %v3352_v6 = vadd.f32 %v3339_v8, %v1713_v23  ;;  %v1799_v28 = vmul.f32 0.0, %v3344_v22 }
 0x37c   : > { %v3356_v13 = vadd.f32 %v3339_v8, %v1711_v27  ;;  %v1835_v29 = vmul.f32 %v3348_v49, %v3348_v49 }
 0x37d   : > { %v1800_v14 = vmul.f32 0.0, %v3352_v6  ;;  %v1837_v31 = vmul.f32 %v1799_v28, %v1799_v28 }
 0x37e   : > { %v1813_v30 = vadd.f32 %v3356_v13, %v3348_v49  ;;  %v1836_v16 = vmul.f32 %v3356_v13, %v3356_v13 }
 0x37f   : > { %v1838_v9 = vmul.f32 %v1800_v14, %v1800_v14 }
 0x380   : > { %v1814_v20 = vadd.f32 %v1813_v30, %v1799_v28  ;;  %v1851_v57 = vadd.f32 %v1836_v16, %v1835_v29 }
 0x382   : > { %v1852_v10 = vadd.f32 %v1851_v57, %v1837_v31  ;;  %v1815_v61 = vadd.f32 %v1814_v20, %v1800_v14 }
 0x384   : > { %v1853_v19 = vadd.f32 %v1852_v10, %v1838_v9 }
 0x386   : > { %v2629_v21 = vpop.f32.mrb[36].mxu0 }
 0x387   : > { %v1716_v48 = vadd.f32 %v2629_v21, %v3014_v32  ;;  %v1663_v18 = vpop.f32.mrb[37].mxu0 }
 0x388   : > { %v1714_v56 = vadd.f32 %v1663_v18, %v3016_v33  ;;  %v2630_v45 = vpop.f32.mrb[38].mxu0 }
 0x389   : > { %v1717_v46 = vadd.f32 %v2630_v45, %v3018_v34  ;;  %v1666_v2 = vpop.f32.mrb[39].mxu0  ;;  %v3369_v5 = vadd.f32 %v3339_v8, %v1716_v48  ;;  %v3576_v48 = vld [vmem:[#allocation8_spill] sm:$0xff]  ;;  %v3577_v45 = vld [vmem:[#allocation9_spill] sm:$0xff] }
 0x38a   : > { %v3372_v50 = vadd.f32 %v3339_v8, %v1714_v56  ;;  %v1715_v44 = vadd.f32 %v1666_v2, %v3020_v35 }
 0x38b   : > { %v3377_v41 = vadd.f32 %v3339_v8, %v1717_v46  ;;  %v1803_v33 = vmul.f32 0.0, %v3369_v5 }
 0x38c   : > { %v1801_v42 = vmul.f32 0.0, %v3372_v50  ;;  %v3380_v32 = vadd.f32 %v3339_v8, %v1715_v44 }
 0x38d   : > { %v1804_v53 = vmul.f32 0.0, %v3377_v41  ;;  %v1841_v35 = vmul.f32 %v1803_v33, %v1803_v33 }
 0x38e   : > { %v1816_v34 = vadd.f32 %v1815_v61, %v1801_v42  ;;  %v1839_v1 = vmul.f32 %v1801_v42, %v1801_v42  ;;  %v1802_v24 = vmul.f32 0.0, %v3380_v32 }
 0x38f   : > { %v1842_v47 = vmul.f32 %v1804_v53, %v1804_v53 }
 0x390   : > { %v1854_v52 = vadd.f32 %v1853_v19, %v1839_v1  ;;  %v1817_v63 = vadd.f32 %v1816_v34, %v1802_v24  ;;  %v1840_v60 = vmul.f32 %v1802_v24, %v1802_v24 }
 0x392   : > { %v1818_v26 = vadd.f32 %v1817_v63, %v1803_v33  ;;  %v1855_v43 = vadd.f32 %v1854_v52, %v1840_v60  ;;  %v3578_v33 = vld [vmem:[#allocation10_spill] sm:$0xff] }
 0x394   : > { %v1856_v51 = vadd.f32 %v1855_v43, %v1841_v35  ;;  %v1819_v54 = vadd.f32 %v1818_v26, %v1804_v53 }
 0x396   : > { %v2633_v55 = vpop.f32.mrb[40].mxu0  ;;  %v1857_v58 = vadd.f32 %v1856_v51, %v1842_v47 }
 0x397   : > { %v1720_v59 = vadd.f32 %v2633_v55, %v3022_v36  ;;  %v1679_v62 = vpop.f32.mrb[41].mxu0 }
 0x398   : > { %v1718_v0 = vadd.f32 %v1679_v62, %v3024_v37  ;;  %v2634_v3 = vpop.f32.mrb[42].mxu0 }
 0x399   : > { %v1721_v4 = vadd.f32 %v2634_v3, %v3026_v38  ;;  %v1682_v7 = vpop.f32.mrb[43].mxu0  ;;  %v3389_v11 = vadd.f32 %v3339_v8, %v1720_v59 }
 0x39a   : > { %v3392_v12 = vadd.f32 %v3339_v8, %v1718_v0  ;;  %v1719_v15 = vadd.f32 %v1682_v7, %v3028_v39 }
 0x39b   : > { %v3397_v23 = vadd.f32 %v3339_v8, %v1721_v4  ;;  %v1807_v37 = vmul.f32 0.0, %v3389_v11 }
 0x39c   : > { %v1805_v17 = vmul.f32 0.0, %v3392_v12  ;;  %v3400_v36 = vadd.f32 %v3339_v8, %v1719_v15 }
 0x39d   : > { %v1808_v29 = vmul.f32 0.0, %v3397_v23  ;;  %v1845_v39 = vmul.f32 %v1807_v37, %v1807_v37 }
 0x39e   : > { %v1820_v38 = vadd.f32 %v1819_v54, %v1805_v17  ;;  %v1843_v25 = vmul.f32 %v1805_v17, %v1805_v17  ;;  %v1806_v27 = vmul.f32 0.0, %v3400_v36 }
 0x39f   : > { %v1846_v20 = vmul.f32 %v1808_v29, %v1808_v29 }
 0x3a0   : > { %v1858_v28 = vadd.f32 %v1857_v58, %v1843_v25  ;;  %v1821_v14 = vadd.f32 %v1820_v38, %v1806_v27  ;;  %v1844_v30 = vmul.f32 %v1806_v27, %v1806_v27 }
 0x3a2   : > { %v1822_v16 = vadd.f32 %v1821_v14, %v1807_v37  ;;  %v1859_v31 = vadd.f32 %v1858_v28, %v1844_v30 }
 0x3a4   : > { %v1860_v57 = vadd.f32 %v1859_v31, %v1845_v39  ;;  %v1823_v9 = vadd.f32 %v1822_v16, %v1808_v29 }
 0x3a6   : > { %v2637_v10 = vpop.f32.mrb[44].mxu0  ;;  %v1861_v61 = vadd.f32 %v1860_v57, %v1846_v20 }
 0x3a7   : > { %v1724_v19 = vadd.f32 %v2637_v10, %v3030_v40  ;;  %v1695_v21 = vpop.f32.mrb[45].mxu0 }
 0x3a8   : > { %v1722_v18 = vadd.f32 %v1695_v21, %v3576_v48  ;;  %v2638_v56 = vpop.f32.mrb[46].mxu0 }
 0x3a9   : > { %v1725_v46 = vadd.f32 %v2638_v56, %v3577_v45  ;;  %v1698_v2 = vpop.f32.mrb[47].mxu0  ;;  %v3409_v44 = vadd.f32 %v3339_v8, %v1724_v19 }
 0x3aa   : > { %v3412_v42 = vadd.f32 %v3339_v8, %v1722_v18  ;;  %v1723_v34 = vadd.f32 %v1698_v2, %v3578_v33 }
 0x3ab   : > { %v3417_v24 = vadd.f32 %v3339_v8, %v1725_v46  ;;  %v1811_v52 = vmul.f32 0.0, %v3409_v44 }
 0x3ac   : > { %v1809_v1 = vmul.f32 0.0, %v3412_v42  ;;  %v3420_v40 = vadd.f32 %v3339_v8, %v1723_v34 }
 0x3ad   : > { %v1812_v26 = vmul.f32 0.0, %v3417_v24  ;;  %v1849_v51 = vmul.f32 %v1811_v52, %v1811_v52 }
 0x3ae   : > { %v1824_v53 = vadd.f32 %v1823_v9, %v1809_v1  ;;  %v1847_v63 = vmul.f32 %v1809_v1, %v1809_v1  ;;  %v1810_v60 = vmul.f32 0.0, %v3420_v40 }
 0x3af   : > { %v1850_v58 = vmul.f32 %v1812_v26, %v1812_v26 }
 0x3b0   : > { %v1862_v35 = vadd.f32 %v1861_v61, %v1847_v63  ;;  %v1825_v43 = vadd.f32 %v1824_v53, %v1810_v60  ;;  %v1848_v47 = vmul.f32 %v1810_v60, %v1810_v60 }
 0x3b2   : > { %v1826_v54 = vadd.f32 %v1825_v43, %v1811_v52  ;;  %v1863_v55 = vadd.f32 %v1862_v35, %v1848_v47 }
 0x3b4   : > { %v1827_v59 = vadd.f32 %v1826_v54, %v1812_v26  ;;  %v1864_v62 = vadd.f32 %v1863_v55, %v1849_v51 }
 0x3b6   : > { %v1828_v0 = vrot.slane %v1827_v59, 4  ;;  %v1865_v8 = vadd.f32 %v1864_v62, %v1850_v58  ;;  %v2319_v58 = vld [vmem:[%s428_s29] ss:$0 sm:$0xff] }
 0x3b8   : > { %v1829_v3 = vadd.f32 %v1828_v0, %v1827_v59  ;;  %v1866_v4 = vrot.slane %v1865_v8, 4 }
 0x3ba   : > { %v1830_v7 = vrot.slane %v1829_v3, 2  ;;  %v1867_v15 = vadd.f32 %v1866_v4, %v1865_v8 }
 0x3bc   : > { %v1831_v17 = vadd.f32 %v1830_v7, %v1829_v3  ;;  %v1868_v37 = vrot.slane %v1867_v15, 2 }
 0x3be   : > { %v1832_v38 = vrot.slane %v1831_v17, 1  ;;  %v1869_v25 = vadd.f32 %v1868_v37, %v1867_v15 }
 0x3c0   : > { %v1833_v27 = vadd.f32 %v1832_v38, %v1831_v17  ;;  %v1870_v28 = vrot.slane %v1869_v25, 1 }
 0x3c2   : > { %v1834_v29 = vmul.f32 0.0625, %v1833_v27  ;;  %v1871_v14 = vadd.f32 %v1870_v28, %v1869_v25 }
 0x3c4   : > { %v1872_v30 = vmul.f32 0.0625, %v1871_v14  ;;  %v1873_v39 = vmul.f32 %v1834_v29, %v1834_v29  ;;  %v1876_v16 = vsub.f32 %v3348_v49, %v1834_v29  ;;  %v1877_v31 = vsub.f32 %v3356_v13, %v1834_v29 }
 0x3c5   : > { %v1878_v20 = vsub.f32 %v3344_v22, %v1834_v29  ;;  %v1879_v57 = vsub.f32 %v3352_v6, %v1834_v29  ;;  %v1880_v9 = vsub.f32 %v3372_v50, %v1834_v29  ;;  %v1881_v10 = vsub.f32 %v3380_v32, %v1834_v29 }
 0x3c6   : > { %v1874_v61 = vsub.f32 %v1872_v30, %v1873_v39  ;;  %v1882_v19 = vsub.f32 %v3369_v5, %v1834_v29  ;;  %v1883_v21 = vsub.f32 %v3377_v41, %v1834_v29  ;;  %v1884_v48 = vsub.f32 %v3392_v12, %v1834_v29 }
 0x3c7   : > { %v1885_v18 = vsub.f32 %v3400_v36, %v1834_v29  ;;  %v1886_v49 = vsub.f32 %v3389_v11, %v1834_v29  ;;  %v1887_v13 = vsub.f32 %v3397_v23, %v1834_v29  ;;  %v1888_v22 = vsub.f32 %v3412_v42, %v1834_v29  ;;  %v2318_v42 = vld [vmem:[%s425_s26] ss:$0 sm:$0xff] }
 0x3c8   : > { %v1875_v6 = vmax.f32 %v1874_v61, 0.0  ;;  %v1889_v50 = vsub.f32 %v3420_v40, %v1834_v29  ;;  %v1890_v32 = vsub.f32 %v3409_v44, %v1834_v29  ;;  %v1891_v5 = vsub.f32 %v3417_v24, %v1834_v29 }
 0x3ca   : > { %v1892_v56 = vadd.f32 1e-05, %v1875_v6 }
 0x3cc   : > { %2699 = vrsqrt.f32 %v1892_v56 }
 0x3d6   : > { %v2700_v41 = vpop.eup %2699 }
 0x3d7   : > { %v1894_v12 = vmul.f32 %v2700_v41, %v1876_v16  ;;  %v1895_v45 = vmul.f32 %v2700_v41, %v1877_v31  ;;  %v1896_v36 = vmul.f32 %v2700_v41, %v1878_v20  ;;  %v1897_v46 = vmul.f32 %v2700_v41, %v1879_v57 }
 0x3d8   : > { %v1898_v11 = vmul.f32 %v2700_v41, %v1880_v9  ;;  %v1899_v2 = vmul.f32 %v2700_v41, %v1881_v10  ;;  %v1900_v23 = vmul.f32 %v2700_v41, %v1882_v19  ;;  %v1901_v33 = vmul.f32 %v2700_v41, %v1883_v21 }
 0x3d9   : > { %v1902_v34 = vmul.f32 %v2700_v41, %v1884_v48  ;;  %v1903_v44 = vmul.f32 %v2700_v41, %v1885_v18  ;;  %v1904_v1 = vmul.f32 %v2700_v41, %v1886_v49  ;;  %v1905_v24 = vmul.f32 %v2700_v41, %v1887_v13 }
 0x3da   : > { %v1906_v40 = vmul.f32 %v2700_v41, %v1888_v22  ;;  %v1907_v52 = vmul.f32 %v2700_v41, %v1889_v50  ;;  %v1908_v53 = vmul.f32 %v2700_v41, %v1890_v32  ;;  %v1909_v63 = vmul.f32 %v2700_v41, %v1891_v5 }
 0x3db   : > { %v1917_v60 = vmul.f32 %v2318_v42, %v1894_v12  ;;  %v1918_v35 = vmul.f32 %v2318_v42, %v1895_v45  ;;  %v1919_v26 = vmul.f32 %v2318_v42, %v1896_v36  ;;  %v1920_v43 = vmul.f32 %v2318_v42, %v1897_v46 }
 0x3dc   : > { %v1921_v47 = vmul.f32 %v2318_v42, %v1898_v11  ;;  %v1922_v51 = vmul.f32 %v2318_v42, %v1899_v2  ;;  %v1923_v54 = vmul.f32 %v2318_v42, %v1900_v23  ;;  %v1924_v55 = vmul.f32 %v2318_v42, %v1901_v33 }
 0x3dd   : > { %v1925_v59 = vmul.f32 %v2318_v42, %v1902_v34  ;;  %v1926_v62 = vmul.f32 %v2318_v42, %v1903_v44  ;;  %v1927_v0 = vmul.f32 %v2318_v42, %v1904_v1  ;;  %v1928_v8 = vmul.f32 %v2318_v42, %v1905_v24 }
 0x3de   : > { %v1929_v3 = vmul.f32 %v2318_v42, %v1906_v40  ;;  %v1930_v4 = vmul.f32 %v2318_v42, %v1907_v52  ;;  %v1931_v7 = vmul.f32 %v2318_v42, %v1908_v53  ;;  %v1932_v15 = vmul.f32 %v2318_v42, %v1909_v63 }
 0x3df   : > { %v3451_v17 = vadd.f32 %v2319_v58, %v1917_v60  ;;  %v3453_v37 = vadd.f32 %v2319_v58, %v1918_v35  ;;  %v1942_v38 = vadd.f32 %v2319_v58, %v1919_v26  ;;  %v1943_v25 = vadd.f32 %v2319_v58, %v1920_v43 }
 0x3e0   : > { %v1944_v27 = vadd.f32 %v2319_v58, %v1921_v47  ;;  %v1945_v28 = vadd.f32 %v2319_v58, %v1922_v51  ;;  %v1946_v29 = vadd.f32 %v2319_v58, %v1923_v54  ;;  %v1947_v14 = vadd.f32 %v2319_v58, %v1924_v55 }
 0x3e1   : > { %v1948_v30 = vadd.f32 %v2319_v58, %v1925_v59  ;;  %v1949_v39 = vadd.f32 %v2319_v58, %v1926_v62  ;;  %v1950_v16 = vadd.f32 %v2319_v58, %v1927_v0  ;;  %v1951_v31 = vadd.f32 %v2319_v58, %v1928_v8 }
 0x3e2   : > { %v1952_v20 = vadd.f32 %v2319_v58, %v1929_v3  ;;  %v1953_v57 = vadd.f32 %v2319_v58, %v1930_v4  ;;  %v1954_v9 = vadd.f32 %v2319_v58, %v1931_v7  ;;  %v1955_v10 = vadd.f32 %v2319_v58, %v1932_v15 }
 0x3e3   : > { %v1956_v61 = vmax.f32 %v3451_v17, 0.0  ;;  %v1957_v19 = vmax.f32 %v3453_v37, 0.0  ;;  %v1958_v21 = vmax.f32 %v1942_v38, 0.0  ;;  %v1959_v48 = vmax.f32 %v1943_v25, 0.0 }
 0x3e4   : > { %v1960_v18 = vmax.f32 %v1944_v27, 0.0  ;;  %v1961_v49 = vmax.f32 %v1945_v28, 0.0  ;;  %v1962_v13 = vmax.f32 %v1946_v29, 0.0  ;;  %v1963_v22 = vmax.f32 %v1947_v14, 0.0  ;;  %1992 = sbr.rel (%p2320_p6) target bundleno = 1008 (0x3f0), region = 102 }
 0x3e5   : > { %v1964_v6 = vmax.f32 %v1948_v30, 0.0  ;;  %v1965_v50 = vmax.f32 %v1949_v39, 0.0  ;;  %v1966_v32 = vmax.f32 %v1950_v16, 0.0  ;;  %v1967_v5 = vmax.f32 %v1951_v31, 0.0 }
 0x3e6   : > { %v1968_v56 = vmax.f32 %v1952_v20, 0.0  ;;  %v1969_v41 = vmax.f32 %v1953_v57, 0.0  ;;  %v1970_v12 = vmax.f32 %v1954_v9, 0.0  ;;  %v1971_v45 = vmax.f32 %v1955_v10, 0.0 }
 0x3e7   : > { %v1974_v36 = vmul.f32 0.0, %v1958_v21  ;;  %v1975_v46 = vmul.f32 0.0, %v1959_v48  ;;  %v1976_v11 = vmul.f32 0.0, %v1960_v18  ;;  %v1977_v2 = vmul.f32 0.0, %v1961_v49 }
 0x3e8   : > { %v1978_v23 = vmul.f32 0.0, %v1962_v13  ;;  %v1979_v33 = vmul.f32 0.0, %v1963_v22  ;;  %v1980_v42 = vmul.f32 0.0, %v1964_v6  ;;  %v1981_v34 = vmul.f32 0.0, %v1965_v50 }
 0x3e9   : > { %v1982_v44 = vmul.f32 0.0, %v1966_v32  ;;  %v1983_v1 = vmul.f32 0.0, %v1967_v5  ;;  %v1984_v24 = vmul.f32 0.0, %v1968_v56  ;;  %v1985_v40 = vmul.f32 0.0, %v1969_v41 }
 0x3ea   : > { %v1986_v52 = vmul.f32 0.0, %v1970_v12  ;;  %v1987_v53 = vmul.f32 0.0, %v1971_v45  ;;  %v1993_v63 = vpack.c.bf16 (!%p2320_p6), %v1957_v19, %v1956_v61  ;;  %v1994_v60 = vpack.c.bf16 (!%p2320_p6), %v1975_v46, %v1974_v36 }
 0x3eb   : > { %v1995_v35 = vpack.c.bf16 %v1977_v2, %v1976_v11  ;;  %v1996_v26 = vpack.c.bf16 %v1979_v33, %v1978_v23  ;;  %v1997_v43 = vpack.c.bf16 %v1981_v34, %v1980_v42  ;;  %v1998_v47 = vpack.c.bf16 %v1983_v1, %v1982_v44 }
 0x3ec   : > { %v1999_v51 = vpack.c.bf16 %v1985_v40, %v1984_v24  ;;  %v2000_v54 = vpack.c.bf16 %v1987_v53, %v1986_v52  ;;  %2001 = vst [vmem:[#allocation3] sm:$0xff] %v1993_v63  ;;  %2002 = vst [vmem:[#allocation3 + $0x8] sm:$0xff] %v1994_v60 }
 0x3ed   : > { %2003 = vst [vmem:[#allocation3 + $0x10] sm:$0xff] %v1995_v35  ;;  %2004 = vst [vmem:[#allocation3 + $0x18] sm:$0xff] %v1996_v26 }
 0x3ee   : > { %2005 = vst [vmem:[#allocation3 + $0x20] sm:$0xff] %v1997_v43  ;;  %2006 = vst [vmem:[#allocation3 + $0x28] sm:$0xff] %v1998_v47 }
 0x3ef   : > { %2007 = vst [vmem:[#allocation3 + $0x30] sm:$0xff] %v1999_v51  ;;  %2008 = vst [vmem:[#allocation3 + $0x38] sm:$0xff] %v2000_v54 }
 0x3f0 PF: > { %p2321_p7 = scmp.ne.s32.totalorder %s2717_s30, 1 }
 0x3f1   : > { %2013 = vst [vmem:[%s3526_s9] sm:$0xff] (!%p2321_p7), %v1956_v61  ;;  %2014 = vst [vmem:[%s3526_s9 + $0x8] sm:$0xff] (!%p2321_p7), %v1957_v19 }
 0x3f2   : > { %2012 = sbr.rel (%p2321_p7) target bundleno = 1017 (0x3f9), region = 106  ;;  %2015 = vst [vmem:[%s3526_s9 + $0x10] sm:$0xff] (!%p2321_p7), %v1974_v36  ;;  %2016 = vst [vmem:[%s3526_s9 + $0x18] sm:$0xff] (!%p2321_p7), %v1975_v46 }
 0x3f3   : > { %2017 = vst [vmem:[%s3526_s9 + $0x20] sm:$0xff] (!%p2321_p7), %v1976_v11  ;;  %2018 = vst [vmem:[%s3526_s9 + $0x28] sm:$0xff] (!%p2321_p7), %v1977_v2 }
 0x3f4   : > { %2019 = vst [vmem:[%s3526_s9 + $0x30] sm:$0xff] (!%p2321_p7), %v1978_v23  ;;  %2020 = vst [vmem:[%s3526_s9 + $0x38] sm:$0xff] (!%p2321_p7), %v1979_v33 }
 0x3f5   : > { %2021 = vst [vmem:[%s3526_s9 + $0x40] sm:$0xff] (!%p2321_p7), %v1980_v42  ;;  %2022 = vst [vmem:[%s3526_s9 + $0x48] sm:$0xff] (!%p2321_p7), %v1981_v34 }
 0x3f6   : > { %2023 = vst [vmem:[%s3526_s9 + $0x50] sm:$0xff] (!%p2321_p7), %v1982_v44  ;;  %2024 = vst [vmem:[%s3526_s9 + $0x58] sm:$0xff] (!%p2321_p7), %v1983_v1 }
 0x3f7   : > { %2025 = vst [vmem:[%s3526_s9 + $0x60] sm:$0xff] (!%p2321_p7), %v1984_v24  ;;  %2026 = vst [vmem:[%s3526_s9 + $0x68] sm:$0xff] (!%p2321_p7), %v1985_v40 }
 0x3f8   : > { %2027 = vst [vmem:[%s3526_s9 + $0x70] sm:$0xff] (!%p2321_p7), %v1986_v52  ;;  %2028 = vst [vmem:[%s3526_s9 + $0x78] sm:$0xff] (!%p2321_p7), %v1987_v53 }
 0x3f9 PF: > { %s19_s11 = sadd.s32 1, %s2725_s11   ;;  %s3579_s30 = smov %s2721_s10 }
 0x3fa   : > { %p16_p8 = scmp.ge.s32.totalorder %s19_s11, 4   ;;  %s3580_s10 = smov %s3582_s12 }
 0x3fc   :  { %18 = sbr.rel (!%p16_p8) target bundleno = 2 (0x2), region = 161 }
 0x403   :  { %2040 = vsyncmov [#allocation5] }
 0x406   :  { %s2041_s17 = vpop.sfrf %2040 }
 0x407   :  { %p2324_p9 = scmp.ne.s32.totalorder %s2041_s17, 0 }
 0x409   :  { %2045 = shalt.err (%p2324_p9)  }

</bundles_post_ra>
